<compile_context>
chip_gen: v7x
topology: tpu7x:2x2x1
jax: 0.10.0
libtpu: 0.0.40
codegen_flags: <defaults>
</compile_context>

<pallas_src>
import functools

import jax
import jax.numpy as jnp
from jax.experimental import pallas as pl
from jax.experimental.pallas import tpu as pltpu


def _round_up(v, m):
    return (v + m - 1) // m * m


# ----------------------------------------------------------------------------
# Fused Pallas kernel: 3x (GCNConv + ReLU) + Linear
# ----------------------------------------------------------------------------
def _fused_pgnn_kernel(a_ref, x_ref, w_ref, b_ref, wfc_ref, bfc_ref, o_ref,
                       h_ref, acc_ref, *, tm, tk, n_pad, n_layers):
    """Grid = (layer, row_tile, k_tile); k (reduction over A_hat columns) last.

    a_ref   : (tm, tk) bf16        A_hat tile for (row_tile, k_tile)
    x_ref   : (n_pad, fpad) bf16   padded node features (VMEM-resident)
    w_ref   : (1, fpad, fpad) f32  this layer's padded GCN weight
    b_ref   : (1, 1, fpad) f32     this layer's padded GCN bias
    wfc_ref : (fpad, fpad) f32     padded Linear weight (already transposed)
    bfc_ref : (1, fpad) f32        padded Linear bias
    o_ref   : (tm, fpad) f32       output row tile (written on last layer only)
    h_ref   : (2*n_pad, fpad) bf16 ping-pong feature scratch (persists on grid)
    acc_ref : (tm, fpad) f32       A_hat @ H accumulator
    """
    layer = pl.program_id(0)
    i = pl.program_id(1)
    k = pl.program_id(2)
    nk = pl.num_programs(2)

    # One-time: stage the padded bf16 node features as the layer-0 input.
    @pl.when((layer == 0) & (i == 0) & (k == 0))
    def _():
        h_ref[pl.ds(0, n_pad), :] = x_ref[...]

    # Fresh accumulator at the start of every reduction sweep.
    @pl.when(k == 0)
    def _():
        acc_ref[...] = jnp.zeros_like(acc_ref)

    # acc += A_hat[row_tile, k_tile] @ H_prev[k_tile rows]  (bf16 MXU, f32 acc)
    src_base = (layer % 2) * n_pad
    h_prev = h_ref[pl.ds(pl.multiple_of(src_base + k * tk, tk), tk), :]
    acc_ref[...] += jnp.dot(a_ref[...], h_prev,
                            preferred_element_type=jnp.float32)

    # End of the reduction: apply weight + bias + ReLU, stage the result for
    # the next layer; on the last GCN layer also fuse the nn.Linear epilogue.
    @pl.when(k == nk - 1)
    def _():
        h_out = jnp.dot(acc_ref[...], w_ref[0],
                        preferred_element_type=jnp.float32)
        h_out = jnp.maximum(h_out + b_ref[0], 0.0)

        dst_base = ((layer + 1) % 2) * n_pad
        h_ref[pl.ds(pl.multiple_of(dst_base + i * tm, tm), tm), :] = (
            h_out.astype(h_ref.dtype))

        @pl.when(layer == n_layers - 1)
        def _():
            out = jnp.dot(h_out, wfc_ref[...],
                          preferred_element_type=jnp.float32) + bfc_ref[...]
            o_ref[...] = out.astype(o_ref.dtype)


def _fused_pgnn(a_hat, x_pad, w_stack, b_stack, wfc, bfc, *, tile=128):
    n_pad = a_hat.shape[0]
    fpad = x_pad.shape[1]
    n_layers = w_stack.shape[0]
    gi = n_pad // tile
    gk = n_pad // tile
    grid = (n_layers, gi, gk)

    flops = (n_layers * 2 * n_pad * n_pad * fpad            # A_hat @ H per layer
             + (n_layers + 1) * 2 * n_pad * fpad * fpad)    # @W per layer + fc
    bytes_accessed = (n_layers * n_pad * n_pad * 2          # A_hat streamed/layer
                      + n_pad * fpad * (2 + 4)              # X in + out
                      + (n_layers + 1) * fpad * fpad * 4)   # weights

    kernel = functools.partial(_fused_pgnn_kernel, tm=tile, tk=tile,
                               n_pad=n_pad, n_layers=n_layers)

    return pl.pallas_call(
        kernel,
        out_shape=jax.ShapeDtypeStruct((n_pad, fpad), jnp.float32),
        grid_spec=pltpu.PrefetchScalarGridSpec(
            num_scalar_prefetch=0,
            grid=grid,
            in_specs=[
                pl.BlockSpec((tile, tile), lambda l, i, k: (i, k)),        # A_hat
                pl.BlockSpec((n_pad, fpad), lambda l, i, k: (0, 0)),       # X
                pl.BlockSpec((1, fpad, fpad), lambda l, i, k: (l, 0, 0)),  # W_l
                pl.BlockSpec((1, 1, fpad), lambda l, i, k: (l, 0, 0)),     # b_l
                pl.BlockSpec((fpad, fpad), lambda l, i, k: (0, 0)),        # W_fc^T
                pl.BlockSpec((1, fpad), lambda l, i, k: (0, 0)),           # b_fc
            ],
            out_specs=pl.BlockSpec((tile, fpad), lambda l, i, k: (i, 0)),
            scratch_shapes=[
                pltpu.VMEM((2 * n_pad, fpad), jnp.bfloat16),  # ping-pong H
                pltpu.VMEM((tile, fpad), jnp.float32),        # accumulator
            ]),
        compiler_params=pltpu.CompilerParams(
            # Layer axis is a true sequential dependency through shared VMEM
            # scratch, and so is the row axis across layers -> all arbitrary.
            dimension_semantics=("arbitrary", "arbitrary", "arbitrary"),
            vmem_limit_bytes=64 * 1024 * 1024),
        cost_estimate=pl.CostEstimate(flops=flops, transcendentals=0,
                                      bytes_accessed=bytes_accessed),
    )(a_hat, x_pad, w_stack, b_stack, wfc, bfc)


# ----------------------------------------------------------------------------
# Glue: GCN adjacency normalization and to_dense_batch (plain JAX)
# ----------------------------------------------------------------------------
def gcn_norm_adj(edge_index, num_nodes):
    src, dst = edge_index[0], edge_index[1]
    a = jnp.zeros((num_nodes, num_nodes), jnp.float32).at[dst, src].add(1.0)
    a = a + jnp.eye(num_nodes, dtype=jnp.float32)            # add self-loops
    deg = a.sum(axis=1)
    dinv = 1.0 / jnp.sqrt(deg)
    return dinv[:, None] * a * dinv[None, :]


def to_dense_batch(x, batch, batch_size, max_num):
    # TODO(synk): PyG's to_dense_batch 3rd positional arg is fill_value; we
    # follow the intended max_num_nodes semantics and return only the dense
    # tensor (the mask is unused by PGNN.forward).
    n = x.shape[0]
    counts = jnp.bincount(batch, length=batch_size)
    starts = jnp.concatenate(
        [jnp.zeros((1,), jnp.int32), jnp.cumsum(counts)[:-1].astype(jnp.int32)])
    pos = jnp.arange(n, dtype=jnp.int32) - starts[batch]
    dense = jnp.zeros((batch_size, max_num, x.shape[1]), x.dtype)
    return dense.at[batch, pos].set(x)


# ----------------------------------------------------------------------------
# PGNN forward
# ----------------------------------------------------------------------------
def pgnn_forward(params, x, edge_index, batch, batch_size, max_num):
    n, f = x.shape
    out_dim = params["b_fc"].shape[0]
    tile = 128
    n_pad = _round_up(n, tile)
    fpad = _round_up(max(4 * f, out_dim), 128)   # lane-dense feature width

    # Normalized adjacency, bf16, zero-padded (zero pad cols keep garbage rows
    # from padded nodes out of real rows).
    a = gcn_norm_adj(edge_index, n)
    a_pad = jnp.zeros((n_pad, n_pad), jnp.bfloat16)
    a_pad = a_pad.at[:n, :n].set(a.astype(jnp.bfloat16))

    x_pad = jnp.zeros((n_pad, fpad), jnp.bfloat16)
    x_pad = x_pad.at[:n, :f].set(x.astype(jnp.bfloat16))

    def pad_w(w):
        return jnp.zeros((fpad, fpad), jnp.float32).at[:w.shape[0], :w.shape[1]].set(w)

    def pad_b(b):
        return jnp.zeros((fpad,), jnp.float32).at[:b.shape[0]].set(b)

    w_stack = jnp.stack([pad_w(params["w1"]), pad_w(params["w2"]), pad_w(params["w3"])])
    b_stack = jnp.stack([pad_b(params["b1"]), pad_b(params["b2"]), pad_b(params["b3"])])
    b_stack = b_stack[:, None, :]                       # (3, 1, fpad)
    wfc = pad_w(params["w_fc"].T)                       # (fpad, fpad)
    bfc = pad_b(params["b_fc"])[None, :]                # (1, fpad)

    out_pad = _fused_pgnn(a_pad, x_pad, w_stack, b_stack, wfc, bfc, tile=tile)
    xt = out_pad[:n, :out_dim]
    # dropout is defined in __init__ but never used in forward -> omitted
    return to_dense_batch(xt, batch, batch_size, max_num)


def init_params(key, num_features_pro, output_dim):
    f = num_features_pro
    ks = jax.random.split(key, 8)

    def glorot(k, fan_in, fan_out):
        lim = jnp.sqrt(6.0 / (fan_in + fan_out))
        return jax.random.uniform(k, (fan_in, fan_out), jnp.float32, -lim, lim)

    return {
        # GCNConv weights stored as [in, out] (PyG lin.weight is [out, in]).
        "w1": glorot(ks[0], f, f),          "b1": jnp.zeros((f,), jnp.float32),
        "w2": glorot(ks[1], f, 2 * f),      "b2": jnp.zeros((2 * f,), jnp.float32),
        "w3": glorot(ks[2], 2 * f, 4 * f),  "b3": jnp.zeros((4 * f,), jnp.float32),
        # nn.Linear weight is [out, in]; transposed at call time.
        "w_fc": glorot(ks[3], output_dim, 4 * f),
        "b_fc": jax.random.uniform(ks[4], (output_dim,), jnp.float32, -0.05, 0.05),
    }


# Pure-JAX reference mirroring the kernel's precision choices (bf16 A_hat and
# bf16 inter-layer features, f32 accumulation) for a sanity check.
def _reference_forward(params, x, edge_index, batch, batch_size, max_num):
    n = x.shape[0]
    a = gcn_norm_adj(edge_index, n).astype(jnp.bfloat16).astype(jnp.float32)
    h = x.astype(jnp.bfloat16).astype(jnp.float32)
    h_f32 = h
    for wk, bk in (("w1", "b1"), ("w2", "b2"), ("w3", "b3")):
        h_f32 = jax.nn.relu((a @ h) @ params[wk] + params[bk])
        h = h_f32.astype(jnp.bfloat16).astype(jnp.float32)
    out = h_f32 @ params["w_fc"].T + params["b_fc"]
    return to_dense_batch(out, batch, batch_size, max_num)


if __name__ == "__main__":
    key = jax.random.PRNGKey(0)
    k_x, k_p = jax.random.split(key)

    # Small shapes (2 chain graphs) -- large enough to exercise the 3x3 A_hat
    # tiling and the 3-deep layer grid.
    num_features_pro = 8
    output_dim = 32
    n1, n2 = 140, 160
    n_nodes = n1 + n2
    batch_size = 2
    max_num = 160

    x = jax.random.normal(k_x, (n_nodes, num_features_pro), jnp.float32)
    batch = jnp.array([0] * n1 + [1] * n2, dtype=jnp.int32)

    src, dst = [], []
    for lo, hi in [(0, n1), (n1, n_nodes)]:
        for i in range(lo, hi - 1):
            src += [i, i + 1]
            dst += [i + 1, i]
    edge_index = jnp.array([src, dst], dtype=jnp.int32)

    params = init_params(k_p, num_features_pro, output_dim)

    fwd = jax.jit(functools.partial(pgnn_forward,
                                    batch_size=batch_size, max_num=max_num))
    out = fwd(params, x, edge_index, batch)
    out = jax.block_until_ready(out)
    assert out.shape == (batch_size, max_num, output_dim), out.shape

    ref = _reference_forward(params, x, edge_index, batch, batch_size, max_num)
    err = float(jnp.max(jnp.abs(out - ref)))
    assert jnp.allclose(out, ref, rtol=5e-2, atol=5e-2), f"max abs err {err}"
    print("KERNEL_OK")
</pallas_src>

<mosaic_0001>
module attributes {stable_mosaic.version = 11 : i64} {
  func.func @_fused_pgnn_kernel(%arg0: i32, %arg1: i32, %arg2: i32, %arg3: memref<128x128xbf16, #tpu.memory_space<vmem>>, %arg4: memref<384x128xbf16, #tpu.memory_space<vmem>>, %arg5: memref<1x128x128xf32, #tpu.memory_space<vmem>>, %arg6: memref<1x1x128xf32, #tpu.memory_space<vmem>>, %arg7: memref<128x128xf32, #tpu.memory_space<vmem>>, %arg8: memref<1x128xf32, #tpu.memory_space<vmem>>, %arg9: memref<128x128xf32, #tpu.memory_space<vmem>>, %arg10: memref<768x128xbf16, #tpu.memory_space<vmem>>, %arg11: memref<128x128xf32, #tpu.memory_space<vmem>>) attributes {dimension_semantics = [#tpu.dimension_semantics<arbitrary>, #tpu.dimension_semantics<arbitrary>, #tpu.dimension_semantics<arbitrary>], iteration_bounds = array<i64: 3, 3, 3>, scalar_prefetch = 0 : i64, scratch_operands = 2 : i64, tpu.core_type = #tpu.core_type<tc>, window_params = [{transform_indices = @transform_0, window_bounds = array<i64: 128, 128>}, {pipeline_mode = #tpu.pipeline_mode<synchronous>, transform_indices = @transform_1, window_bounds = array<i64: 384, 128>}, {transform_indices = @transform_2, window_bounds = array<i64: 1, 128, 128>}, {transform_indices = @transform_3, window_bounds = array<i64: 1, 1, 128>}, {pipeline_mode = #tpu.pipeline_mode<synchronous>, transform_indices = @transform_4, window_bounds = array<i64: 128, 128>}, {pipeline_mode = #tpu.pipeline_mode<synchronous>, transform_indices = @transform_5, window_bounds = array<i64: 1, 128>}, {transform_indices = @transform_6, window_bounds = array<i64: 128, 128>}]} {
    %c0_i32 = arith.constant 0 : i32
    %0 = arith.cmpi eq, %arg0, %c0_i32 : i32
    %c0_i32_0 = arith.constant 0 : i32
    %1 = arith.cmpi eq, %arg1, %c0_i32_0 : i32
    %2 = arith.andi %0, %1 : i1
    %c0_i32_1 = arith.constant 0 : i32
    %3 = arith.cmpi eq, %arg2, %c0_i32_1 : i32
    %4 = arith.andi %2, %3 : i1
    %5 = arith.extui %4 : i1 to i32
    %c0_i32_2 = arith.constant 0 : i32
    %6 = arith.cmpi ne, %5, %c0_i32_2 : i32
    scf.if %6 {
      %c0_17 = arith.constant 0 : index
      %c0_18 = arith.constant 0 : index
      %34 = vector.load %arg4[%c0_17, %c0_18] : memref<384x128xbf16, #tpu.memory_space<vmem>>, vector<384x128xbf16>
      %c0_19 = arith.constant 0 : index
      %c0_20 = arith.constant 0 : index
      %35 = vector.load %arg10[%c0_19, %c0_20] : memref<768x128xbf16, #tpu.memory_space<vmem>>, vector<384x128xbf16>
      tpu.vector_store %arg10[%c0_19, %c0_20], %34 {strides = array<i32>} : memref<768x128xbf16, #tpu.memory_space<vmem>>, vector<384x128xbf16>,
    } else {
    }
    %c0_i32_3 = arith.constant 0 : i32
    %7 = arith.cmpi eq, %arg2, %c0_i32_3 : i32
    %8 = arith.extui %7 : i1 to i32
    %c0_i32_4 = arith.constant 0 : i32
    %9 = arith.cmpi ne, %8, %c0_i32_4 : i32
    scf.if %9 {
      %cst_17 = arith.constant 0.000000e+00 : f32
      %34 = vector.broadcast %cst_17 : f32 to vector<128x128xf32>
      %c0_18 = arith.constant 0 : index
      %c0_19 = arith.constant 0 : index
      %35 = vector.load %arg11[%c0_18, %c0_19] : memref<128x128xf32, #tpu.memory_space<vmem>>, vector<128x128xf32>
      tpu.vector_store %arg11[%c0_18, %c0_19], %34 {strides = array<i32>} : memref<128x128xf32, #tpu.memory_space<vmem>>, vector<128x128xf32>,
    } else {
    }
    %c2_i32 = arith.constant 2 : i32
    %c0_i32_5 = arith.constant 0 : i32
    %10 = arith.cmpi eq, %c2_i32, %c0_i32_5 : i32
    %c1_i32 = arith.constant 1 : i32
    %11 = arith.select %10, %c1_i32, %c2_i32 : i32
    %12 = arith.remsi %arg0, %11 : i32
    %c0_i32_6 = arith.constant 0 : i32
    %13 = arith.cmpi ne, %12, %c0_i32_6 : i32
    %c0_i32_7 = arith.constant 0 : i32
    %14 = arith.cmpi slt, %12, %c0_i32_7 : i32
    %c0_i32_8 = arith.constant 0 : i32
    %15 = arith.cmpi slt, %11, %c0_i32_8 : i32
    %16 = arith.xori %14, %15 : i1
    %17 = arith.andi %16, %13 : i1
    %18 = arith.addi %12, %11 : i32
    %19 = arith.select %17, %18, %12 : i32
    %c384_i32 = arith.constant 384 : i32
    %20 = arith.muli %19, %c384_i32 : i32
    %c128_i32 = arith.constant 128 : i32
    %21 = arith.muli %arg2, %c128_i32 : i32
    %22 = arith.addi %20, %21 : i32
    %23 = tpu.assume_multiple %22, 128 : i32
    %24 = arith.index_cast %23 : i32 to index
    %c0 = arith.constant 0 : index
    %25 = vector.load %arg10[%24, %c0] : memref<768x128xbf16, #tpu.memory_space<vmem>>, vector<128x128xbf16>
    %c0_9 = arith.constant 0 : index
    %c0_10 = arith.constant 0 : index
    %26 = vector.load %arg11[%c0_9, %c0_10] : memref<128x128xf32, #tpu.memory_space<vmem>>, vector<128x128xf32>
    %c0_11 = arith.constant 0 : index
    %c0_12 = arith.constant 0 : index
    %27 = vector.load %arg3[%c0_11, %c0_12] : memref<128x128xbf16, #tpu.memory_space<vmem>>, vector<128x128xbf16>
    %cst = arith.constant dense<0.000000e+00> : vector<128x128xf32>
    %28 = tpu.matmul %27, %25, %cst {dimension_numbers = #tpu.dot_dimension_numbers<[1], [0], [0], [1], [0, 0, 1, 1], [], []>} : vector<128x128xbf16>, vector<128x128xbf16>, vector<128x128xf32> -> vector<128x128xf32>
    %29 = arith.addf %26, %28 : vector<128x128xf32>
    %c0_13 = arith.constant 0 : index
    %c0_14 = arith.constant 0 : index
    %30 = vector.load %arg11[%c0_13, %c0_14] : memref<128x128xf32, #tpu.memory_space<vmem>>, vector<128x128xf32>
    tpu.vector_store %arg11[%c0_13, %c0_14], %29 {strides = array<i32>} : memref<128x128xf32, #tpu.memory_space<vmem>>, vector<128x128xf32>,
    %c2_i32_15 = arith.constant 2 : i32
    %31 = arith.cmpi eq, %arg2, %c2_i32_15 : i32
    %32 = arith.extui %31 : i1 to i32
    %c0_i32_16 = arith.constant 0 : i32
    %33 = arith.cmpi ne, %32, %c0_i32_16 : i32
    scf.if %33 {
      %c0_17 = arith.constant 0 : index
      %c0_18 = arith.constant 0 : index
      %34 = vector.load %arg11[%c0_17, %c0_18] : memref<128x128xf32, #tpu.memory_space<vmem>>, vector<128x128xf32>
      %c0_19 = arith.constant 0 : index
      %c0_20 = arith.constant 0 : index
      %c0_21 = arith.constant 0 : index
      %35 = vector.load %arg5[%c0_19, %c0_20, %c0_21] : memref<1x128x128xf32, #tpu.memory_space<vmem>>, vector<1x128x128xf32>
      %36 = vector.shape_cast %35 : vector<1x128x128xf32> to vector<128x128xf32>
      %cst_22 = arith.constant dense<0.000000e+00> : vector<128x128xf32>
      %37 = tpu.matmul %34, %36, %cst_22 {dimension_numbers = #tpu.dot_dimension_numbers<[1], [0], [0], [1], [0, 0, 1, 1], [], []>} : vector<128x128xf32>, vector<128x128xf32>, vector<128x128xf32> -> vector<128x128xf32>
      %c0_23 = arith.constant 0 : index
      %c0_24 = arith.constant 0 : index
      %c0_25 = arith.constant 0 : index
      %38 = vector.load %arg6[%c0_23, %c0_24, %c0_25] : memref<1x1x128xf32, #tpu.memory_space<vmem>>, vector<1x1x128xf32>
      %39 = vector.shape_cast %38 : vector<1x1x128xf32> to vector<1x128xf32>
      %40 = vector.broadcast %39 : vector<1x128xf32> to vector<128x128xf32>
      %41 = arith.addf %37, %40 : vector<128x128xf32>
      %cst_26 = arith.constant 0.000000e+00 : f32
      %42 = vector.broadcast %cst_26 : f32 to vector<128x128xf32>
      %43 = arith.maximumf %41, %42 : vector<128x128xf32>
      %c1_i32_27 = arith.constant 1 : i32
      %44 = arith.addi %arg0, %c1_i32_27 : i32
      %c2_i32_28 = arith.constant 2 : i32
      %c0_i32_29 = arith.constant 0 : i32
      %45 = arith.cmpi eq, %c2_i32_28, %c0_i32_29 : i32
      %c1_i32_30 = arith.constant 1 : i32
      %46 = arith.select %45, %c1_i32_30, %c2_i32_28 : i32
      %47 = arith.remsi %44, %46 : i32
      %c0_i32_31 = arith.constant 0 : i32
      %48 = arith.cmpi ne, %47, %c0_i32_31 : i32
      %c0_i32_32 = arith.constant 0 : i32
      %49 = arith.cmpi slt, %47, %c0_i32_32 : i32
      %c0_i32_33 = arith.constant 0 : i32
      %50 = arith.cmpi slt, %46, %c0_i32_33 : i32
      %51 = arith.xori %49, %50 : i1
      %52 = arith.andi %51, %48 : i1
      %53 = arith.addi %47, %46 : i32
      %54 = arith.select %52, %53, %47 : i32
      %c384_i32_34 = arith.constant 384 : i32
      %55 = arith.muli %54, %c384_i32_34 : i32
      %56 = arith.truncf %43 : vector<128x128xf32> to vector<128x128xbf16>
      %c128_i32_35 = arith.constant 128 : i32
      %57 = arith.muli %arg1, %c128_i32_35 : i32
      %58 = arith.addi %55, %57 : i32
      %59 = tpu.assume_multiple %58, 128 : i32
      %60 = arith.index_cast %59 : i32 to index
      %c0_36 = arith.constant 0 : index
      %61 = vector.load %arg10[%60, %c0_36] : memref<768x128xbf16, #tpu.memory_space<vmem>>, vector<128x128xbf16>
      tpu.vector_store %arg10[%60, %c0_36], %56 {strides = array<i32>} : memref<768x128xbf16, #tpu.memory_space<vmem>>, vector<128x128xbf16>,
      %c2_i32_37 = arith.constant 2 : i32
      %62 = arith.cmpi eq, %arg0, %c2_i32_37 : i32
      %63 = arith.extui %62 : i1 to i32
      %c0_i32_38 = arith.constant 0 : i32
      %64 = arith.cmpi ne, %63, %c0_i32_38 : i32
      scf.if %64 {
        %c0_39 = arith.constant 0 : index
        %c0_40 = arith.constant 0 : index
        %65 = vector.load %arg7[%c0_39, %c0_40] : memref<128x128xf32, #tpu.memory_space<vmem>>, vector<128x128xf32>
        %cst_41 = arith.constant dense<0.000000e+00> : vector<128x128xf32>
        %66 = tpu.matmul %43, %65, %cst_41 {dimension_numbers = #tpu.dot_dimension_numbers<[1], [0], [0], [1], [0, 0, 1, 1], [], []>} : vector<128x128xf32>, vector<128x128xf32>, vector<128x128xf32> -> vector<128x128xf32>
        %c0_42 = arith.constant 0 : index
        %c0_43 = arith.constant 0 : index
        %67 = vector.load %arg8[%c0_42, %c0_43] : memref<1x128xf32, #tpu.memory_space<vmem>>, vector<1x128xf32>
        %68 = vector.broadcast %67 : vector<1x128xf32> to vector<128x128xf32>
        %69 = arith.addf %66, %68 : vector<128x128xf32>
        %c0_44 = arith.constant 0 : index
        %c0_45 = arith.constant 0 : index
        %70 = vector.load %arg9[%c0_44, %c0_45] : memref<128x128xf32, #tpu.memory_space<vmem>>, vector<128x128xf32>
        tpu.vector_store %arg9[%c0_44, %c0_45], %69 {strides = array<i32>} : memref<128x128xf32, #tpu.memory_space<vmem>>, vector<128x128xf32>,
      } else {
      }
    } else {
    }
    return
  }
  func.func @transform_0(%arg0: i32, %arg1: i32, %arg2: i32) -> (i32, i32) {
    %c0_i32 = arith.constant 0 : i32
    return %arg1, %arg2 : i32, i32
  }
  func.func @transform_1(%arg0: i32, %arg1: i32, %arg2: i32) -> (i32, i32) {
    %c0_i32 = arith.constant 0 : i32
    %c0_i32_0 = arith.constant 0 : i32
    %c0_i32_1 = arith.constant 0 : i32
    return %c0_i32, %c0_i32_0 : i32, i32
  }
  func.func @transform_2(%arg0: i32, %arg1: i32, %arg2: i32) -> (i32, i32, i32) {
    %c0_i32 = arith.constant 0 : i32
    %c0_i32_0 = arith.constant 0 : i32
    %c0_i32_1 = arith.constant 0 : i32
    return %arg0, %c0_i32, %c0_i32_0 : i32, i32, i32
  }
  func.func @transform_3(%arg0: i32, %arg1: i32, %arg2: i32) -> (i32, i32, i32) {
    %c0_i32 = arith.constant 0 : i32
    %c0_i32_0 = arith.constant 0 : i32
    %c0_i32_1 = arith.constant 0 : i32
    return %arg0, %c0_i32, %c0_i32_0 : i32, i32, i32
  }
  func.func @transform_4(%arg0: i32, %arg1: i32, %arg2: i32) -> (i32, i32) {
    %c0_i32 = arith.constant 0 : i32
    %c0_i32_0 = arith.constant 0 : i32
    %c0_i32_1 = arith.constant 0 : i32
    return %c0_i32, %c0_i32_0 : i32, i32
  }
  func.func @transform_5(%arg0: i32, %arg1: i32, %arg2: i32) -> (i32, i32) {
    %c0_i32 = arith.constant 0 : i32
    %c0_i32_0 = arith.constant 0 : i32
    %c0_i32_1 = arith.constant 0 : i32
    return %c0_i32, %c0_i32_0 : i32, i32
  }
  func.func @transform_6(%arg0: i32, %arg1: i32, %arg2: i32) -> (i32, i32) {
    %c0_i32 = arith.constant 0 : i32
    %c0_i32_0 = arith.constant 0 : i32
    return %arg1, %c0_i32 : i32, i32
  }
}

</mosaic_0001>

<bundles_post_ra>
// kernel: pgnn_forward.1
= control target key start
LH: loop header
LB: loop body
LE: loop exit
PB: predicated region body
PF: predicated region fallthrough
CT: control target
= control target key end

     0   :  { %s3202_s0 = inlined_call_operand.hbm [shape: bf16[384,384], index: 0, kind: input, shape index: {}]   ;;  %s3203_s1 = inlined_call_operand.hbm [shape: bf16[384,128], index: 1, kind: input, shape index: {}]   ;;  %s3204_s2 = inlined_call_operand.hbm [shape: f32[3,128,128], index: 2, kind: input, shape index: {}]   ;;  %s3205_s3 = inlined_call_operand.hbm [shape: f32[3,1,128], index: 3, kind: input, shape index: {}]   ;;  %s3206_s4 = inlined_call_operand.hbm [shape: f32[128,128], index: 4, kind: input, shape index: {}]   ;;  %s3207_s5 = inlined_call_operand.hbm [shape: f32[1,128], index: 5, kind: input, shape index: {}]   ;;  %s3208_s6 = inlined_call_operand.hbm [shape: f32[384,128], index: 6, kind: output, shape index: {}]  }
   0x1   :  { %3249 = sst [smem:[#allocation39_spill]] %s3202_s0 }
   0x2   :  { %3250 = sst [smem:[#allocation40_spill]] %s3203_s1 }
   0x3   :  { %3251 = sst [smem:[#allocation41_spill]] %s3204_s2 }
   0x4   :  { %3252 = sst [smem:[#allocation42_spill]] %s3205_s3 }
   0x5   :  { %3253 = sst [smem:[#allocation43_spill]] %s3206_s4 }
   0x6   :  { %3254 = sst [smem:[#allocation44_spill]] %s3207_s5 }
   0x7   :  { %3255 = sst [smem:[#allocation45_spill]] %s3208_s6 }
   0x8   :  { %11 = vsyncpa [#allocation5], 0 }
   0x9   :  { %13 = vsyncpa [#allocation5 + $0x1], 0 }
   0xa   :  { %14 = vsyncpa [#allocation8], 0 }
   0xb   :  { %15 = vsyncpa [#allocation13], 0 }
   0xc   :  { %16 = vsyncpa [#allocation6], 0 }
   0xd   :  { %18 = vsyncpa [#allocation6 + $0x1], 0  ;;  %s2530_s21 = smov 0   ;;  %s2532_s22 = smov 0  }
   0xe   :  { %s2534_s23 = smov 0   ;;  %s2536_s24 = smov 0  }
   0xf   :  { %s2538_s25 = smov 0   ;;  %s2540_s26 = smov 0  }
  0x10   :  { %s2542_s27 = smov 0   ;;  %s2544_s28 = smov 0  }
  0x11   :  { %s2546_s29 = smov 0   ;;  %s2548_s30 = smov 0  }
  0x12   :  { %s2550_s7 = smov 0   ;;  %s2552_s8 = smov 0  }
  0x13   :  { %s2554_s9 = smov 0   ;;  %s2556_s10 = smov 0  }
  0x14   :  { %s2558_s11 = smov 0   ;;  %s2560_s12 = smov 0  }
  0x15 LB: > { %3256 = sst [smem:[#allocation21_spill]] %s2418_s21  ;;  %s36_s13 = sadd.s32 1, %s2466_s9  ;;  %s2478_s12 = sphi %s2560_s12, %s24_s12   ;;  %s2474_s11 = sphi %s2558_s11, %s3350_s11   ;;  %s2470_s10 = sphi %s2556_s10, %s3341_s10   ;;  %s2466_s9 = sphi %s2554_s9, %s3340_s9   ;;  %s2462_s8 = sphi %s2552_s8, %s3349_s8   ;;  %s2458_s7 = sphi %s2550_s7, %s3339_s7   ;;  %s2454_s30 = sphi %s2548_s30, %s3338_s30   ;;  %s2450_s29 = sphi %s2546_s29, %s3337_s29   ;;  %s2446_s28 = sphi %s2544_s28, %s3348_s28   ;;  %s2442_s27 = sphi %s2542_s27, %s3347_s27   ;;  %s2438_s26 = sphi %s2540_s26, %s3335_s26   ;;  %s2434_s25 = sphi %s2538_s25, %s3346_s25   ;;  %s2430_s24 = sphi %s2536_s24, %s3345_s24   ;;  %s2426_s23 = sphi %s2534_s23, %s3333_s23   ;;  %s2422_s22 = sphi %s2532_s22, %s3344_s22   ;;  %s2418_s21 = sphi %s2530_s21, %s3343_s21  }
  0x16   : > { %3257 = sst [smem:[#allocation22_spill]] %s2426_s23  ;;  %s39_s14 = sadd.s32 1, %s2470_s10 }
  0x17   : > { %3258 = sst [smem:[#allocation23_spill]] %s2438_s26  ;;  %p37_p0 = scmp.ge.s32.totalorder %s36_s13, 3 }
  0x18   : > { %3259 = sst [smem:[#allocation24_spill]] %s2450_s29  ;;  %s52_s15 = sadd.s32 1, %s2450_s29 }
  0x19   : > { %3260 = sst [smem:[#allocation25_spill]] %s2454_s30  ;;  %p59_p1 = scmp.ne.s32.totalorder %s2450_s29, %s2446_s28 }
  0x1a   : > { %3261 = sst [smem:[#allocation26_spill]] %s2458_s7  ;;  %p3222_p2 = scmp.eq.s32.totalorder %s2478_s12, 0 }
  0x1b   : > { %3262 = sst [smem:[#allocation27_spill]] %s2462_s8  ;;  %s3352_s13 = smov (%p37_p0, %s36_s13), 0 }
  0x1c   : > { %3263 = sst [smem:[#allocation28_spill]] %s2466_s9  ;;  %s3354_s14 = smov (!%p37_p0, %s39_s14), %s2470_s10 }
  0x1d   : > { %3264 = sst [smem:[#allocation29_spill]] %s2470_s10  ;;  %s48_s16 = ssub.s32 %s2466_s9, %s3352_s13 }
  0x1e   : > { %3265 = sst [smem:[#allocation30_spill]] %s2478_s12  ;;  %p2625_p3 = por %p3222_p2, %p59_p1 }
  0x1f   : > { %3266 = sst [smem:[#allocation31_spill]] %s3352_s13  ;;  %p3223_p4 = scmp.ge.s32.totalorder %s3354_s14, 3 }
  0x20   : > { %3267 = sst [smem:[#allocation32_spill]] %s3354_s14  ;;  %p3221_p5 = scmp.lt.s32.totalorder %s2478_s12, 27 }
  0x21   : > { %s2633_s18 = scalar_select %p3223_p4, 0, %s3354_s14  }
  0x22   : > { %s267_s19 = sand.u32 1, %s2478_s12   ;;  %s269_s13 = sand.u32 1, %s2450_s29  }
  0x23   : > { %3269 = sst [smem:[#allocation33_spill]] %s2633_s18  ;;  %s2639_s20 = ssub.s32 %s2470_s10, %s2633_s18 }
  0x24   : > { %s49_s6 = sor.u32 %s48_s16, %s2639_s20  ;;  %p191_p6 = scmp.eq.s32.totalorder %s2639_s20, 0 }
  0x25   : > { %p50_p7 = scmp.eq.s32.totalorder %s49_s6, 0  ;;  %s1497_s30 = sshll.u32 %s269_s13, 6 }
  0x26   : > { %s1902_s7 = smul.u32 48, %s2470_s10  ;;  %s271_s4 = scalar_lea.vmem [#allocation4], %s1497_s30 }
  0x27   : > { %s2646_s8 = scalar_select %p50_p7, %s2450_s29, %s52_s15  }
  0x28   : > { %s277_s3 = sadd.s32 %s2466_s9, %s1902_s7  ;;  %s280_s2 = sshll.u32 %s271_s4, 4  ;;  %s2654_s2 = int_to_ptr.vmem [resolvable:$true] %s280_s2 }
  0x29   : > { %3270 = sst [smem:[#allocation34_spill]] %s2646_s8  ;;  %s1500_s5 = sshll.u32 %s277_s3, 6 }
  0x2a   : > { %s3271_s0 = sld [smem:[#allocation39_spill]]  ;;  %p2660_p8 = pnand %p3221_p5, %p2625_p3 }
  0x2b   : > { %s2664_s3 = scalar_lea.sflag [#allocation5], %s267_s19 }
  0x2c   : > { %p2128_p10 = pneg %p2660_p8 }
  0x30   : > { %s2652_s26 = scalar_lea.hbm %s3271_s0, %s1500_s5  ;;  %s2131_s30 = scalar_lea.hbm %s3271_s0, 9216 }
  0x31   : > { %s2126_s4 = scalar_lea.hbm %s2652_s26, 1024  ;;  %p2132_p13 = scmp.lt.u32.totalorder %s2652_s26, %s3271_s0 }
  0x32   : > { %p2127_p9 = scmp.ne.s32.totalorder %s2652_s26, %s2126_s4  ;;  %p2133_p0 = scmp.lt.u32.totalorder %s2131_s30, %s2126_s4 }
  0x33   : > { %p2135_p3 = scmp.lt.u32.totalorder %s2126_s4, %s2652_s26 }
  0x34   : > { %p2129_p11 = pnand %p2128_p10, %p2127_p9  ;;  %p2134_p1 = por %p2133_p0, %p2132_p13 }
  0x36   : > { %p2130_p12 = pneg %p2129_p11  ;;  %p2136_p7 = por %p2135_p3, %p2134_p1 }
  0x38   : > { %p2137_p5 = pnand %p2136_p7, %p2130_p12 }
  0x3a   : > { %2140 = shalt.err (!%p2137_p5)
}
  0x3b   : > { %s2141_s14 = scalar_lea.vmem %s2654_s2, 1024  ;;  %s2480_s15 = smov [#allocation4]  }
  0x3c   : > { %p2142_p9 = scmp.ne.s32.totalorder %s2654_s2, %s2141_s14  ;;  %s2146_s16 = sshll.u32 %s2480_s15, 4  ;;  %s2147_s16 = int_to_ptr.vmem [resolvable:$false] %s2146_s16 }
  0x3d   : > { %s2148_s17 = scalar_lea.vmem %s2147_s16, 2048  ;;  %p2149_p4 = scmp.lt.s32.totalorder %s2654_s2, %s2147_s16 }
  0x3e   : > { %p2144_p11 = pnand %p2142_p9, %p2128_p10  ;;  %p2150_p13 = scmp.lt.s32.totalorder %s2148_s17, %s2141_s14 }
  0x40   : > { %p2145_p2 = pneg %p2144_p11  ;;  %p2151_p0 = por %p2150_p13, %p2149_p4 }
  0x42   : > { %p2152_p1 = pnand %p2151_p0, %p2145_p2 }
  0x44   : > { %2155 = shalt.err (!%p2152_p1)
}
  0x45   : > { %s2481_s19 = smov 192   ;;  %s3224_s4 = smov 64  }
  0x46   : > { %s3225_s1 = smov 4   ;;  %s2695_s5 = sadd.s32 4294967295, %s2478_s12  }
  0x47   : > { %1936 = dma.hbm_to_vmem [thread:$0]  (!%p2660_p8), %s2652_s26, 1024, %s2654_s2, %s2664_s3, %s2481_s19, %s3224_s4, %s3225_s1  }
  0x48   : > { %s1491_s30 = sadd.s32 4294967294, %s2478_s12   ;;  %p65_p2 = scmp.ne.s32.totalorder %s2446_s28, %s2442_s27 }
  0x49   : > { %p3228_p4 = scmp.eq.s32.totalorder %s2695_s5, 0  ;;  %p112_p5 = scmp.ne.s32.totalorder %s2434_s25, %s2430_s24 }
  0x4a   : > { %s193_s7 = sadd.s32 1, %s2426_s23  ;;  %p203_p10 = scmp.ne.s32.totalorder %s2426_s23, %s2422_s22 }
  0x4b   : > { %p2708_p12 = por %p3228_p4, %p65_p2  ;;  %p2714_p8 = por %p112_p5, %p3228_p4 }
  0x4c   : > { %s3275_s26 = sld [smem:[#allocation23_spill]]  ;;  %p204_p3 = scmp.eq.s32.totalorder %s2695_s5, 26 }
  0x4d   : > { %s3273_s6 = scalar_select %p2708_p12, 1, 0 }
  0x4e   : > { %s3274_s2 = scalar_select %p2714_p8, 1, 0 }
  0x4f   : > { %s2721_s13 = scalar_select %p191_p6, %s2426_s23, %s193_s7  }
  0x50   : > { %p209_p7 = scmp.ne.s32.totalorder %s2422_s22, %s2418_s21  ;;  %p210_p9 = scmp.eq.s32.totalorder %s1491_s30, 26 }
  0x51   : > { %3276 = sst [smem:[#allocation35_spill]] %s2721_s13  ;;  %p1492_p11 = scmp.ge.s32.totalorder %s2478_s12, 1 }
  0x52   : > { %p2727_p13 = por %p204_p3, %p203_p10  ;;  %p217_p0 = scmp.lt.s32.totalorder %s2478_s12, 28 }
  0x53   : > { %p2732_p1 = por %p210_p9, %p209_p7  ;;  %s2484_s14 = smov [#allocation7]  }
  0x54   : > { %s3277_s24 = scalar_select %p2727_p13, 1, 0 }
  0x55   : > { %s3278_s27 = scalar_select %p2732_p1, 1, 0 }
  0x56   : > { %p2736_p2 = pnand %p1492_p11, %p217_p0  ;;  %s229_s15 = sshll.u32 %s2484_s14, 4  ;;  %s230_s15 = int_to_ptr.vmem [resolvable:$true] %s229_s15 }
  0x57   : > { %3279 = sst [smem:[#allocation36_spill]] %s3278_s27  ;;  %s43_s17 = sadd.s32 1, %s2474_s11 }
  0x58   : > { %s3280_s20 = scalar_select %p2736_p2, 1, 0 }
  0x59   : > { %p1923_p6 = pneg %p2736_p2  ;;  %s3282_s4 = sld [smem:[#allocation40_spill]] }
  0x5b   : > { %p2744_p5 = pnand %p1923_p6, %p3228_p4 }
  0x5d   : > { %s3281_s16 = scalar_select %p2744_p5, 1, 0 }
  0x5e   : > { %p2760_p7 = pneg %p2744_p5 }
  0x5f   : > { %s2156_s1 = scalar_lea.hbm %s3282_s4, 3072 }
  0x60   : > { %p2157_p3 = scmp.ne.s32.totalorder %s3282_s4, %s2156_s1  ;;  %p2163_p0 = scmp.lt.u32.totalorder %s2156_s1, %s3282_s4 }
  0x62   : > { %p2159_p9 = pnand %p2760_p7, %p2157_p3 }
  0x64   : > { %p2160_p11 = pneg %p2159_p9 }
  0x66   : > { %p2165_p6 = pnand %p2163_p0, %p2160_p11 }
  0x68   : > { %2168 = shalt.err (!%p2165_p6)
}
  0x69   : > { %s2169_s30 = scalar_lea.vmem %s230_s15, 3072  ;;  %p2177_p13 = scmp.lt.s32.totalorder %s230_s15, %s230_s15 }
  0x6a   : > { %p2170_p4 = scmp.ne.s32.totalorder %s230_s15, %s2169_s30  ;;  %p2178_p8 = scmp.lt.s32.totalorder %s2169_s30, %s2169_s30 }
  0x6c   : > { %p2172_p10 = pnand %p2170_p4, %p2760_p7  ;;  %p2179_p12 = por %p2178_p8, %p2177_p13 }
  0x6e   : > { %p2173_p1 = pneg %p2172_p10 }
  0x70   : > { %p2180_p2 = pnand %p2179_p12, %p2173_p1 }
  0x72   : > { %2183 = shalt.err (!%p2180_p2)
}
  0x73   : > { %s3284_s0 = smov 4   ;;  %s3285_s18 = smov 64  }
  0x74   : > { %s3286_s19 = sld [smem:[#allocation32_spill]]  ;;  %p3288_p12 = scmp.eq.s32.totalorder %s2478_s12, 0 }
  0x75   : > { %1926 = dma.hbm_to_vmem [thread:$0]  (!%p2744_p5), %s3282_s4, 3072, %s230_s15, [#allocation8], %s3285_s18, %s3285_s18, %s3284_s0  }
  0x76   : > { %p3289_p8 = scmp.ne.s32.totalorder %s3275_s26, %s2434_s25  ;;  %s3235_s7 = sand.u32 1, %s3275_s26  }
  0x77   : > { %s1564_s30 = sshll.u32 %s2474_s11, 11  ;;  %s1501_s10 = sshll.u32 %s3235_s7, 7 }
  0x78   : > { %p108_p13 = por %p3289_p8, %p3288_p12  ;;  %s3291_s8 = sld [smem:[#allocation41_spill]] }
  0x79   : > { %s294_s0 = scalar_lea.vmem [#allocation9], %s1501_s10  ;;  %p3293_p10 = scmp.lt.s32.totalorder %s2478_s12, 27 }
  0x7a   : > { %p3287_p4 = scmp.ge.s32.totalorder %s3286_s19, 3  ;;  %s301_s18 = sshll.u32 %s294_s0, 4  ;;  %s2800_s18 = int_to_ptr.vmem [resolvable:$true] %s301_s18 }
  0x7b   : > { %p2804_p3 = pnand %p3293_p10, %p108_p13  ;;  %s3295_s7 = sadd.s32 1, %s3275_s26 }
  0x7c   : > { %s3356_s17 = smov (!%p3287_p4, %s43_s17), %s2474_s11 }
  0x7d   : > { %p45_p1 = scmp.ge.s32.totalorder %s3356_s17, 3  ;;  %p3246_p11 = pneg %p2804_p3 }
  0x7e   : > { %s3292_s13 = smov %s3291_s8  ;;  %s2796_s29 = scalar_lea.hbm %s3291_s8, %s1564_s30 }
  0x7f   : > { %s3358_s17 = smov (%p45_p1, %s3356_s17), 0  ;;  %s2184_s9 = scalar_lea.hbm %s2796_s29, 2048 }
  0x80   : > { %3290 = sst [smem:[#allocation37_spill]] %s3358_s17  ;;  %s96_s15 = ssub.s32 %s2474_s11, %s3358_s17 }
  0x81   : > { %p97_p2 = scmp.eq.s32.totalorder %s96_s15, 0  ;;  %p2185_p9 = scmp.ne.s32.totalorder %s2796_s29, %s2184_s9 }
  0x82   : > { %s3294_s19 = scalar_select %p2804_p3, 1, 0 }
  0x83   : > { %s2811_s8 = scalar_select %p97_p2, %s3275_s26, %s3295_s7  }
  0x84   : > { %p2187_p0 = pnand %p3246_p11, %p2185_p9  ;;  %s2189_s1 = scalar_lea.hbm %s3292_s13, 6144 }
  0x85   : > { %3296 = sst [smem:[#allocation38_spill]] %s2811_s8  ;;  %p2190_p4 = scmp.lt.u32.totalorder %s2796_s29, %s3292_s13 }
  0x86   : > { %p2188_p6 = pneg %p2187_p0  ;;  %p2191_p12 = scmp.lt.u32.totalorder %s2189_s1, %s2184_s9 }
  0x87   : > { %p2193_p13 = scmp.lt.u32.totalorder %s2184_s9, %s2796_s29 }
  0x88   : > { %p2192_p8 = por %p2191_p12, %p2190_p4 }
  0x8a   : > { %p2194_p1 = por %p2193_p13, %p2192_p8 }
  0x8c   : > { %p2195_p2 = pnand %p2194_p1, %p2188_p6 }
  0x8e   : > { %2198 = shalt.err (!%p2195_p2)
}
  0x8f   : > { %s2199_s7 = scalar_lea.vmem %s2800_s18, 2048  ;;  %s2485_s30 = smov [#allocation9]  }
  0x90   : > { %p2200_p10 = scmp.ne.s32.totalorder %s2800_s18, %s2199_s7  ;;  %s2204_s10 = sshll.u32 %s2485_s30, 4  ;;  %s2205_s10 = int_to_ptr.vmem [resolvable:$false] %s2204_s10 }
  0x91   : > { %s2206_s15 = scalar_lea.vmem %s2205_s10, 4096  ;;  %p2207_p5 = scmp.lt.s32.totalorder %s2800_s18, %s2205_s10 }
  0x92   : > { %p2202_p9 = pnand %p2200_p10, %p3246_p11  ;;  %p2208_p4 = scmp.lt.s32.totalorder %s2206_s15, %s2199_s7 }
  0x94   : > { %p2203_p0 = pneg %p2202_p9  ;;  %p2209_p12 = por %p2208_p4, %p2207_p5 }
  0x96   : > { %p2210_p8 = pnand %p2209_p12, %p2203_p0 }
  0x98   : > { %2213 = shalt.err (!%p2210_p8)
}
  0x99   : > { %s2486_s9 = smov 128   ;;  %s2487_s1 = smov 8  }
  0x9a   : > { %1939 = dma.hbm_to_vmem [thread:$0]  (!%p2804_p3), %s2796_s29, 2048, %s2800_s18, %s2664_s3, %s2486_s9, %s2486_s9, %s2487_s1  }
  0x9b   : > { %s2488_s0 = smov [#allocation11]   ;;  %s2489_s30 = smov [#allocation12]  }
  0x9c   : > { %s242_s4 = sshll.u32 %s2488_s0, 4  ;;  %s256_s13 = sshll.u32 %s2489_s30, 4  ;;  %s243_s4 = int_to_ptr.vmem [resolvable:$true] %s242_s4  ;;  %s257_s13 = int_to_ptr.vmem [resolvable:$true] %s256_s13 }
  0x9d   : > { %s3297_s7 = sld [smem:[#allocation43_spill]] }
  0xa3   : > { %s3298_s15 = smov %s3297_s7  ;;  %s2214_s8 = scalar_lea.hbm %s3297_s7, 2048 }
  0xa4   : > { %p2215_p5 = scmp.ne.s32.totalorder %s3298_s15, %s2214_s8  ;;  %p2221_p1 = scmp.lt.u32.totalorder %s2214_s8, %s3298_s15 }
  0xa6   : > { %p2217_p6 = pnand %p2215_p5, %p2760_p7 }
  0xa8   : > { %p2218_p13 = pneg %p2217_p6 }
  0xaa   : > { %p2223_p2 = pnand %p2221_p1, %p2218_p13 }
  0xac   : > { %2226 = shalt.err (!%p2223_p2)
}
  0xad   : > { %s2227_s29 = scalar_lea.vmem %s243_s4, 2048  ;;  %p2235_p4 = scmp.lt.s32.totalorder %s243_s4, %s243_s4 }
  0xae   : > { %p2228_p10 = scmp.ne.s32.totalorder %s243_s4, %s2227_s29  ;;  %p2236_p12 = scmp.lt.s32.totalorder %s2227_s29, %s2227_s29 }
  0xb0   : > { %p2230_p9 = pnand %p2228_p10, %p2760_p7  ;;  %p2237_p8 = por %p2236_p12, %p2235_p4 }
  0xb2   : > { %p2231_p0 = pneg %p2230_p9 }
  0xb4   : > { %p2238_p11 = pnand %p2237_p8, %p2231_p0 }
  0xb6   : > { %2241 = shalt.err (!%p2238_p11)
}
  0xb7   : > { %p3299_p5 = scmp.ne.s32.totalorder %s3281_s16, 0  ;;  %s3300_s17 = sld [smem:[#allocation44_spill]] }
  0xb9   : > { %1929 = dma.hbm_to_vmem [thread:$0]  (!%p3299_p5), %s3298_s15, 2048, %s243_s4, [#allocation8], %s2486_s9, %s2486_s9, %s2487_s1  }
  0xbd   : > { %s2242_s18 = scalar_lea.hbm %s3300_s17, 16 }
  0xbe   : > { %p2243_p6 = scmp.ne.s32.totalorder %s3300_s17, %s2242_s18  ;;  %p2249_p11 = scmp.lt.u32.totalorder %s2242_s18, %s3300_s17 }
  0xc0   : > { %p2245_p13 = pnand %p2243_p6, %p2760_p7 }
  0xc2   : > { %p2246_p1 = pneg %p2245_p13 }
  0xc4   : > { %p2251_p2 = pnand %p2249_p11, %p2246_p1 }
  0xc6   : > { %2254 = shalt.err (!%p2251_p2)
}
  0xc7   : > { %s2255_s7 = scalar_lea.vmem %s257_s13, 16  ;;  %s2262_s4 = scalar_lea.vmem %s257_s13, 32 }
  0xc8   : > { %p2256_p10 = scmp.ne.s32.totalorder %s257_s13, %s2255_s7  ;;  %p2263_p4 = scmp.lt.s32.totalorder %s257_s13, %s257_s13 }
  0xc9   : > { %p2264_p12 = scmp.lt.s32.totalorder %s2262_s4, %s2255_s7 }
  0xca   : > { %p2258_p9 = pnand %p2256_p10, %p2760_p7 }
  0xcb   : > { %p2265_p8 = por %p2264_p12, %p2263_p4 }
  0xcc   : > { %p2259_p0 = pneg %p2258_p9 }
  0xce   : > { %p2266_p3 = pnand %p2265_p8, %p2259_p0 }
  0xd0   : > { %2269 = shalt.err (!%p2266_p3)
}
  0xd1   : > { %1932 = dma.hbm_to_vmem [thread:$0]  (!%p3299_p5), %s3300_s17, 16, %s257_s13, [#allocation13]  }
  0xd2   : > { %s1504_s29 = sshll.u32 %s2474_s11, 4  ;;  %s3301_s23 = sand.u32 1, %s3275_s26  }
  0xd3   : > { %s314_s14 = scalar_lea.vmem [#allocation10], %s3301_s23  ;;  %s3302_s18 = sld [smem:[#allocation42_spill]] }
  0xd4   : > { %s321_s27 = sshll.u32 %s314_s14, 4  ;;  %p3303_p3 = scmp.ne.s32.totalorder %s3294_s19, 0  ;;  %s322_s27 = int_to_ptr.vmem [resolvable:$true] %s321_s27 }
  0xd6   : > { %p3304_p6 = pneg %p3303_p3 }
  0xd9   : > { %s319_s8 = scalar_lea.hbm %s3302_s18, %s1504_s29  ;;  %s2275_s10 = scalar_lea.hbm %s3302_s18, 48 }
  0xda   : > { %s2270_s0 = scalar_lea.hbm %s319_s8, 16  ;;  %p2276_p5 = scmp.lt.u32.totalorder %s319_s8, %s3302_s18 }
  0xdb   : > { %p2271_p7 = scmp.ne.s32.totalorder %s319_s8, %s2270_s0  ;;  %p2277_p11 = scmp.lt.u32.totalorder %s2275_s10, %s2270_s0 }
  0xdc   : > { %p2279_p10 = scmp.lt.u32.totalorder %s2270_s0, %s319_s8 }
  0xdd   : > { %p2273_p13 = pnand %p2271_p7, %p3304_p6  ;;  %p2278_p2 = por %p2277_p11, %p2276_p5 }
  0xdf   : > { %p2274_p1 = pneg %p2273_p13  ;;  %p2280_p9 = por %p2279_p10, %p2278_p2 }
  0xe1   : > { %p2281_p0 = pnand %p2280_p9, %p2274_p1 }
  0xe3   : > { %2284 = shalt.err (!%p2281_p0)
}
  0xe4   : > { %s2285_s26 = scalar_lea.vmem %s322_s27, 16  ;;  %p3305_p12 = pmov %p3304_p6 }
  0xe5   : > { %p2286_p4 = scmp.ne.s32.totalorder %s322_s27, %s2285_s26  ;;  %s2490_s4 = smov [#allocation10]  }
  0xe6   : > { %s2290_s9 = sshll.u32 %s2490_s4, 4  ;;  %s2291_s9 = int_to_ptr.vmem [resolvable:$false] %s2290_s9 }
  0xe7   : > { %p2288_p8 = pnand %p2286_p4, %p3305_p12  ;;  %s2292_s1 = scalar_lea.vmem %s2291_s9, 32 }
  0xe8   : > { %p2293_p6 = scmp.lt.s32.totalorder %s322_s27, %s2291_s9  ;;  %p2294_p13 = scmp.lt.s32.totalorder %s2292_s1, %s2285_s26 }
  0xe9   : > { %p2289_p7 = pneg %p2288_p8 }
  0xea   : > { %p2295_p5 = por %p2294_p13, %p2293_p6 }
  0xec   : > { %p2296_p11 = pnand %p2295_p5, %p2289_p7 }
  0xee   : > { %2299 = shalt.err (!%p2296_p11)
}
  0xef   : > { %1942 = dma.hbm_to_vmem [thread:$0]  (!%p3303_p3), %s319_s8, 16, %s322_s27, %s2664_s3  }
  0xf0   : > { %p3306_p1 = scmp.ne.s32.totalorder %s3280_s20, 0 }
  0xf1   : > { %s332_s29 = sand.u32 (!%p3306_p1), 1, %s2695_s5   ;;  %s334_s23 = sand.u32 (!%p3306_p1), 1, %s2446_s28  }
  0xf2   : > { %330 = sbr.rel (%p3306_p1) target bundleno = 1097 (0x449), region = 44  ;;  %s1506_s14 = sshll.u32 (!%p3306_p1), %s334_s23, 6 }
  0xf3   : > { %s333_s21 = scalar_lea.sflag (!%p3306_p1), [#allocation5], %s332_s29  ;;  %s2900_s12 = scalar_lea.vmem (!%p3306_p1), [#allocation4], %s1506_s14 }
  0xf4   : > { %p3307_p2 = scmp.ne.s32.totalorder (!%p3306_p1), %s3273_s6, 0 }
  0xf9   : > { %2393 = dma.done.wait (%p3307_p2), %s333_s21, 1024  }
  0xfa   : > { %2395 = vsyncadd (%p3307_p2), %s333_s21, 4294966272  ;;  %p3308_p10 = scmp.eq.s32.totalorder %s2695_s5, 0 }
  0xfc   : > { %2397 = dma.done.wait (%p3308_p10), [#allocation8], 3072   ;;  %p3309_p3 = pmov %p3308_p10 }
  0xfd   : > { %s347_s3 = sand.u32 1, %s2434_s25   ;;  %p3310_p9 = scmp.ne.s32.totalorder %s3274_s2, 0 }
  0xfe   : > { %2399 = vsyncadd (%p3309_p3), [#allocation8], 4294964224  ;;  %s1508_s20 = sshll.u32 %s347_s3, 7 }
  0xff   : > { %s2911_s19 = scalar_lea.vmem [#allocation9], %s1508_s20 }
 0x100   : > { %2401 = dma.done.wait (%p3310_p9), %s333_s21, 2064  }
 0x101   : > { %2403 = vsyncadd (%p3310_p9), %s333_s21, 4294965232  ;;  %s2917_s6 = scalar_lea.vmem [#allocation10], %s347_s3  ;;  %p3311_p0 = pmov %p3309_p3 }
 0x103   : > { %2405 = dma.done.wait (%p3311_p0), [#allocation8], 2048   ;;  %p3312_p4 = pmov %p3311_p0 }
 0x104   : > { %p3313_p12 = pmov %p3311_p0 }
 0x105   : > { %2407 = vsyncadd (%p3312_p4), [#allocation8], 4294965248 }
 0x106   : > { %2409 = dma.done.wait (%p3313_p12), [#allocation13], 16   ;;  %p3314_p8 = pmov %p3311_p0 }
 0x107   : > { %s3315_s27 = sld [smem:[#allocation27_spill]]  ;;  %s3316_s8 = sld [smem:[#allocation26_spill]] }
 0x108   : > { %2411 = vsyncadd (%p3314_p8), [#allocation13], 4294967280  ;;  %s3317_s2 = sld [smem:[#allocation25_spill]]  ;;  %s400_s0 = sand.u32 1, %s2422_s22  }
 0x109   : > { %s1511_s16 = sshll.u32 %s400_s0, 7 }
 0x10a   : > { %s2933_s30 = scalar_lea.vmem [#allocation14], %s1511_s16 }
 0x10d   : > { %p406_p7 = scmp.eq.s32.totalorder %s3315_s27, 0  ;;  %p407_p6 = scmp.eq.s32.totalorder %s3316_s8, 0 }
 0x10e   : > { %p410_p5 = scmp.eq.s32.totalorder %s3317_s2, 0 }
 0x10f   : > { %p408_p13 = pnand %p407_p6, %p406_p7 }
 0x111   : > { %p409_p11 = pneg %p408_p13 }
 0x113   : > { %p411_p1 = pnand %p410_p5, %p409_p11 }
 0x114   : > { %v2094_v0 = vld [vmem:[#allocation7] sm:$0xff] (!%p411_p1)   ;;  %v2095_v1 = vld [vmem:[#allocation7 + $0x8] sm:$0xff] (!%p411_p1)   ;;  %v2096_v2 = vld [vmem:[#allocation7 + $0x10] sm:$0xff] (!%p411_p1)  }
 0x115   : > { %414 = sbr.rel (%p411_p1) target bundleno = 289 (0x121), region = 72  ;;  %607 = vst [vmem:[#allocation2] sm:$0xff] (!%p411_p1), %v2094_v0  ;;  %608 = vst [vmem:[#allocation2 + $0x8] sm:$0xff] (!%p411_p1), %v2095_v1  ;;  %v2097_v3 = vld [vmem:[#allocation7 + $0x18] sm:$0xff] (!%p411_p1)   ;;  %v2098_v4 = vld [vmem:[#allocation7 + $0x20] sm:$0xff] (!%p411_p1)  }
 0x116   : > { %609 = vst [vmem:[#allocation2 + $0x10] sm:$0xff] (!%p411_p1), %v2096_v2  ;;  %610 = vst [vmem:[#allocation2 + $0x18] sm:$0xff] (!%p411_p1), %v2097_v3  ;;  %v2099_v5 = vld [vmem:[#allocation7 + $0x28] sm:$0xff] (!%p411_p1)   ;;  %v2100_v6 = vld [vmem:[#allocation7 + $0x30] sm:$0xff] (!%p411_p1)  }
 0x117   : > { %611 = vst [vmem:[#allocation2 + $0x20] sm:$0xff] (!%p411_p1), %v2098_v4  ;;  %612 = vst [vmem:[#allocation2 + $0x28] sm:$0xff] (!%p411_p1), %v2099_v5  ;;  %v2101_v7 = vld [vmem:[#allocation7 + $0x38] sm:$0xff] (!%p411_p1)   ;;  %v2102_v8 = vld [vmem:[#allocation7 + $0x40] sm:$0xff] (!%p411_p1)  }
 0x118   : > { %613 = vst [vmem:[#allocation2 + $0x30] sm:$0xff] (!%p411_p1), %v2100_v6  ;;  %614 = vst [vmem:[#allocation2 + $0x38] sm:$0xff] (!%p411_p1), %v2101_v7  ;;  %v2103_v9 = vld [vmem:[#allocation7 + $0x48] sm:$0xff] (!%p411_p1)   ;;  %v2104_v10 = vld [vmem:[#allocation7 + $0x50] sm:$0xff] (!%p411_p1)  }
 0x119   : > { %615 = vst [vmem:[#allocation2 + $0x40] sm:$0xff] (!%p411_p1), %v2102_v8  ;;  %616 = vst [vmem:[#allocation2 + $0x48] sm:$0xff] (!%p411_p1), %v2103_v9  ;;  %v2105_v11 = vld [vmem:[#allocation7 + $0x58] sm:$0xff] (!%p411_p1)   ;;  %v2106_v12 = vld [vmem:[#allocation7 + $0x60] sm:$0xff] (!%p411_p1)  }
 0x11a   : > { %617 = vst [vmem:[#allocation2 + $0x50] sm:$0xff] (!%p411_p1), %v2104_v10  ;;  %618 = vst [vmem:[#allocation2 + $0x58] sm:$0xff] (!%p411_p1), %v2105_v11  ;;  %v2107_v13 = vld [vmem:[#allocation7 + $0x68] sm:$0xff] (!%p411_p1)   ;;  %v2108_v14 = vld [vmem:[#allocation7 + $0x70] sm:$0xff] (!%p411_p1)  }
 0x11b   : > { %619 = vst [vmem:[#allocation2 + $0x60] sm:$0xff] (!%p411_p1), %v2106_v12  ;;  %620 = vst [vmem:[#allocation2 + $0x68] sm:$0xff] (!%p411_p1), %v2107_v13  ;;  %v2109_v15 = vld [vmem:[#allocation7 + $0x78] sm:$0xff] (!%p411_p1)   ;;  %v2110_v16 = vld [vmem:[#allocation7 + $0x80] sm:$0xff] (!%p411_p1)  }
 0x11c   : > { %621 = vst [vmem:[#allocation2 + $0x70] sm:$0xff] %v2108_v14  ;;  %622 = vst [vmem:[#allocation2 + $0x78] sm:$0xff] %v2109_v15  ;;  %v2111_v17 = vld [vmem:[#allocation7 + $0x88] sm:$0xff]   ;;  %v2112_v18 = vld [vmem:[#allocation7 + $0x90] sm:$0xff]  }
 0x11d   : > { %623 = vst [vmem:[#allocation2 + $0x80] sm:$0xff] %v2110_v16  ;;  %624 = vst [vmem:[#allocation2 + $0x88] sm:$0xff] %v2111_v17  ;;  %v2113_v19 = vld [vmem:[#allocation7 + $0x98] sm:$0xff]   ;;  %v2114_v20 = vld [vmem:[#allocation7 + $0xa0] sm:$0xff]  }
 0x11e   : > { %625 = vst [vmem:[#allocation2 + $0x90] sm:$0xff] %v2112_v18  ;;  %626 = vst [vmem:[#allocation2 + $0x98] sm:$0xff] %v2113_v19  ;;  %v2115_v21 = vld [vmem:[#allocation7 + $0xa8] sm:$0xff]   ;;  %v2116_v22 = vld [vmem:[#allocation7 + $0xb0] sm:$0xff]  }
 0x11f   : > { %627 = vst [vmem:[#allocation2 + $0xa0] sm:$0xff] %v2114_v20  ;;  %628 = vst [vmem:[#allocation2 + $0xa8] sm:$0xff] %v2115_v21  ;;  %v2117_v23 = vld [vmem:[#allocation7 + $0xb8] sm:$0xff]  }
 0x120   : > { %629 = vst [vmem:[#allocation2 + $0xb0] sm:$0xff] %v2116_v22  ;;  %630 = vst [vmem:[#allocation2 + $0xb8] sm:$0xff] %v2117_v23 }
 0x121 PF: > { %s3318_s5 = sld [smem:[#allocation25_spill]] }
 0x127   : > { %p1536_p2 = scmp.ne.s32.totalorder %s3318_s5, 0 }
 0x128   : > { %v2491_v24 = vmov (!%p1536_p2), 0.0  }
 0x129   : > { %633 = sbr.rel (%p1536_p2) target bundleno = 305 (0x131), region = 76  ;;  %634 = vst [vmem:[#allocation3] sm:$0xff] (!%p1536_p2), %v2491_v24  ;;  %635 = vst [vmem:[#allocation3 + $0x8] sm:$0xff] (!%p1536_p2), %v2491_v24 }
 0x12a   : > { %636 = vst [vmem:[#allocation3 + $0x10] sm:$0xff] (!%p1536_p2), %v2491_v24  ;;  %637 = vst [vmem:[#allocation3 + $0x18] sm:$0xff] (!%p1536_p2), %v2491_v24 }
 0x12b   : > { %638 = vst [vmem:[#allocation3 + $0x20] sm:$0xff] (!%p1536_p2), %v2491_v24  ;;  %639 = vst [vmem:[#allocation3 + $0x28] sm:$0xff] (!%p1536_p2), %v2491_v24 }
 0x12c   : > { %640 = vst [vmem:[#allocation3 + $0x30] sm:$0xff] (!%p1536_p2), %v2491_v24  ;;  %641 = vst [vmem:[#allocation3 + $0x38] sm:$0xff] (!%p1536_p2), %v2491_v24 }
 0x12d   : > { %642 = vst [vmem:[#allocation3 + $0x40] sm:$0xff] (!%p1536_p2), %v2491_v24  ;;  %643 = vst [vmem:[#allocation3 + $0x48] sm:$0xff] (!%p1536_p2), %v2491_v24 }
 0x12e   : > { %644 = vst [vmem:[#allocation3 + $0x50] sm:$0xff] (!%p1536_p2), %v2491_v24  ;;  %645 = vst [vmem:[#allocation3 + $0x58] sm:$0xff] (!%p1536_p2), %v2491_v24 }
 0x12f   : > { %646 = vst [vmem:[#allocation3 + $0x60] sm:$0xff] (!%p1536_p2), %v2491_v24  ;;  %647 = vst [vmem:[#allocation3 + $0x68] sm:$0xff] (!%p1536_p2), %v2491_v24 }
 0x130   : > { %648 = vst [vmem:[#allocation3 + $0x70] sm:$0xff] %v2491_v24  ;;  %649 = vst [vmem:[#allocation3 + $0x78] sm:$0xff] %v2491_v24 }
 0x131 PF: > { %s3319_s10 = sld [smem:[#allocation27_spill]]  ;;  %s3320_s13 = sld [smem:[#allocation25_spill]]  ;;  %v2118_v25 = vld [vmem:[%s2900_s12] sm:$0xff]   ;;  %v2120_v35 = vld [vmem:[%s2900_s12 + $0x8] sm:$0xff]   ;;  %v2122_v37 = vld [vmem:[%s2900_s12 + $0x10] sm:$0xff]  }
 0x132   : > { %v2119_v26 = vld [vmem:[%s2900_s12 + $0x20] sm:$0xff]   ;;  %1662 = vmatprep.mubr.bf16.mxu0 %v2118_v25  ;;  %v2121_v36 = vld [vmem:[%s2900_s12 + $0x28] sm:$0xff]   ;;  %v2123_v38 = vld [vmem:[%s2900_s12 + $0x30] sm:$0xff]  }
 0x133   : > { %1670 = vmatprep.mubr.bf16.mxu1 %v2119_v26  ;;  %v2124_v39 = vld [vmem:[%s2900_s12 + $0x18] sm:$0xff]   ;;  %v679_v41 = vld [vmem:[#allocation3 + $0x10] sm:$0xff]  ;;  %v677_v43 = vld [vmem:[#allocation3] sm:$0xff] }
 0x134   : > { %v2125_v40 = vld [vmem:[%s2900_s12 + $0x38] sm:$0xff]   ;;  %v678_v53 = vld [vmem:[#allocation3 + $0x8] sm:$0xff]  ;;  %v683_v1 = vld [vmem:[#allocation3 + $0x30] sm:$0xff] }
 0x135   : > { %v685_v44 = vld [vmem:[#allocation3 + $0x40] sm:$0xff]  ;;  %v680_v47 = vld [vmem:[#allocation3 + $0x18] sm:$0xff]  ;;  %v686_v54 = vld [vmem:[#allocation3 + $0x48] sm:$0xff] }
 0x136   : > { %v687_v42 = vld [vmem:[#allocation3 + $0x50] sm:$0xff]  ;;  %v688_v48 = vld [vmem:[#allocation3 + $0x58] sm:$0xff]  ;;  %v681_v3 = vld [vmem:[#allocation3 + $0x20] sm:$0xff] }
 0x137   : > { %p650_p10 = scmp.lt.s32.totalorder %s3319_s10, 0  ;;  %s651_s7 = ssub.s32 0, %s3319_s10  ;;  %v691_v2 = vld [vmem:[#allocation3 + $0x70] sm:$0xff]  ;;  %v689_v4 = vld [vmem:[#allocation3 + $0x60] sm:$0xff]  ;;  %v684_v7 = vld [vmem:[#allocation3 + $0x38] sm:$0xff] }
 0x138   : > { %s1537_s26 = smin.u32 %s3319_s10, %s651_s7  ;;  %s1540_s29 = sshll.u32 %s3320_s13, 7  ;;  %v692_v8 = vld [vmem:[#allocation3 + $0x78] sm:$0xff]  ;;  %v682_v13 = vld [vmem:[#allocation3 + $0x28] sm:$0xff] }
 0x139   : > { %s653_s4 = sand.u32 1, %s1537_s26   ;;  %v690_v14 = vld [vmem:[#allocation3 + $0x68] sm:$0xff]  ;;  %p1550_p9 = scmp.ne.s32.totalorder %s3320_s13, 2 }
 0x13a   : > { %s654_s9 = ssub.s32 0, %s653_s4  ;;  %v906_v25 = vld [vmem:[%s2911_s19] sm:$0xff] (!%p1550_p9)  ;;  %v907_v26 = vld [vmem:[%s2911_s19 + $0x8] sm:$0xff] (!%p1550_p9)  ;;  %s3321_s12 = sld [smem:[#allocation27_spill]] (!%p1550_p9) }
 0x13b   : > { %s3360_s9 = smov (!%p650_p10, %s654_s9), %s653_s4 }
 0x13c   : > { %p1539_p3 = scmp.lt.s32.totalorder %s3360_s9, 0  ;;  %s660_s1 = sadd.s32 2, %s3360_s9 }
 0x13e   : > { %s3362_s1 = smov (!%p1539_p3, %s660_s1), %s3360_s9 }
 0x13f   : > { %s662_s23 = smul.u32 384, %s3362_s1 }
 0x140   : > { %s1090_s27 = sadd.s32 (!%p1550_p9), 1, %s3321_s12  ;;  %p1557_p12 = scmp.ne.s32.totalorder (!%p1550_p9), %s3321_s12, 2 }
 0x141   : > { %s664_s14 = sadd.s32 %s1540_s29, %s662_s23  ;;  %s1092_s8 = ssub.s32 (!%p1550_p9), 0, %s1090_s27 }
 0x142   : > { %s665_s21 = sshra.s32 %s664_s14, 4  ;;  %s1552_s2 = smin.u32 (!%p1550_p9), %s1092_s8, %s1090_s27 }
 0x143   : > { %s1541_s3 = sshll.u32 %s665_s21, 3  ;;  %s1094_s16 = sand.u32 (!%p1550_p9), 1, %s1552_s2  }
 0x144   : > { %s2942_s20 = scalar_lea.vmem [#allocation2], %s1541_s3  ;;  %p1091_p0 = scmp.lt.s32.totalorder (!%p1550_p9), %s1090_s27, 0 }
 0x145   : > { %v669_v27 = vld [vmem:[%s2942_s20] sm:$0xff]  ;;  %v670_v28 = vld [vmem:[%s2942_s20 + $0x8] sm:$0xff]  ;;  %v671_v29 = vld [vmem:[%s2942_s20 + $0x10] sm:$0xff]  ;;  %s1095_s5 = ssub.s32 (!%p1550_p9), 0, %s1094_s16 }
 0x146   : > { %1646 = vmatprep.subr.bf16.mxu0 %v669_v27  ;;  %1854 = vmatprep.subr.bf16.mxu1 %v669_v27  ;;  %v672_v30 = vld [vmem:[%s2942_s20 + $0x18] sm:$0xff]  ;;  %v673_v31 = vld [vmem:[%s2942_s20 + $0x20] sm:$0xff]  ;;  %v674_v32 = vld [vmem:[%s2942_s20 + $0x28] sm:$0xff] }
 0x147   : > { %1647 = vmatpush3.bf16.msra.mxu0 %v669_v27  ;;  %1862 = vmatpush3.bf16.msra.mxu1 %v669_v27  ;;  %v675_v33 = vld [vmem:[%s2942_s20 + $0x30] sm:$0xff]  ;;  %v676_v34 = vld [vmem:[%s2942_s20 + $0x38] sm:$0xff] }
 0x148   : > { %1648 = vmatprep.subr.bf16.mxu0 %v670_v28  ;;  %1855 = vmatprep.subr.bf16.mxu1 %v670_v28  ;;  %v908_v27 = vld [vmem:[%s2911_s19 + $0x10] sm:$0xff] (!%p1550_p9) }
 0x14b   : > { %1649 = vmatpush3.bf16.msra.mxu0 %v670_v28  ;;  %1863 = vmatpush3.bf16.msra.mxu1 %v670_v28  ;;  %v1790_v28 = vpack.c.bf16 (!%p1550_p9), %v907_v26, %v906_v25 }
 0x14c   : > { %1650 = vmatprep.subr.bf16.mxu0 %v671_v29  ;;  %1856 = vmatprep.subr.bf16.mxu1 %v671_v29 }
 0x14f   : > { %1651 = vmatpush3.bf16.msra.mxu0 %v671_v29  ;;  %1864 = vmatpush3.bf16.msra.mxu1 %v671_v29  ;;  %v909_v29 = vld [vmem:[%s2911_s19 + $0x18] sm:$0xff] (!%p1550_p9) }
 0x150   : > { %1652 = vmatprep.subr.bf16.mxu0 %v672_v30  ;;  %1857 = vmatprep.subr.bf16.mxu1 %v672_v30 }
 0x153   : > { %1653 = vmatpush3.bf16.msra.mxu0 %v672_v30  ;;  %1865 = vmatpush3.bf16.msra.mxu1 %v672_v30  ;;  %v1794_v30 = vpack.c.bf16 (!%p1550_p9), %v909_v29, %v908_v27 }
 0x154   : > { %1654 = vmatprep.subr.bf16.mxu0 %v673_v31  ;;  %1858 = vmatprep.subr.bf16.mxu1 %v673_v31 }
 0x157   : > { %1655 = vmatpush3.bf16.msra.mxu0 %v673_v31  ;;  %1866 = vmatpush3.bf16.msra.mxu1 %v673_v31  ;;  %v910_v31 = vld [vmem:[%s2911_s19 + $0x20] sm:$0xff] (!%p1550_p9) }
 0x158   : > { %1656 = vmatprep.subr.bf16.mxu0 %v674_v32  ;;  %1859 = vmatprep.subr.bf16.mxu1 %v674_v32 }
 0x15b   : > { %1657 = vmatpush3.bf16.msra.mxu0 %v674_v32  ;;  %1867 = vmatpush3.bf16.msra.mxu1 %v674_v32  ;;  %v911_v32 = vld [vmem:[%s2911_s19 + $0x28] sm:$0xff] (!%p1550_p9) }
 0x15c   : > { %1658 = vmatprep.subr.bf16.mxu0 %v675_v33  ;;  %1860 = vmatprep.subr.bf16.mxu1 %v675_v33 }
 0x15f   : > { %1659 = vmatpush3.bf16.msra.mxu0 %v675_v33  ;;  %1868 = vmatpush3.bf16.msra.mxu1 %v675_v33  ;;  %v1798_v33 = vpack.c.bf16 (!%p1550_p9), %v911_v32, %v910_v31 }
 0x160   : > { %1660 = vmatprep.subr.bf16.mxu0 %v676_v34  ;;  %1861 = vmatprep.subr.bf16.mxu1 %v676_v34 }
 0x163   : > { %1661 = vmatpush3.bf16.msra.mxu0 %v676_v34  ;;  %1869 = vmatpush3.bf16.msra.mxu1 %v676_v34 }
 0x164   : > { %1791 = vmatprep.subr.bf16.mxu0 (!%p1550_p9), %v1790_v28  ;;  %1870 = vmatprep.subr.bf16.mxu1 (!%p1550_p9), %v1790_v28 }
 0x166   : > { %1663 = vmatmul.mubr.bf16.vlgmr.msra.gmra.mrb[0].mxu0 %v2120_v35  ;;  %1671 = vmatmul.mubr.bf16.vlgmr.msra.gmra.mrb[0].mxu1 %v2121_v36  ;;  %v912_v36 = vld [vmem:[%s2911_s19 + $0x30] sm:$0xff] (!%p1550_p9) }
 0x167   : > { %1666 = vmatprep.mubr.bf16.mxu0 %v2122_v37  ;;  %1674 = vmatprep.mubr.bf16.mxu1 %v2123_v38  ;;  %v913_v37 = vld [vmem:[%s2911_s19 + $0x38] sm:$0xff] (!%p1550_p9) }
 0x168   : > { %1793 = vmatpush3.bf16.msra.mxu0 (!%p1550_p9), %v1790_v28  ;;  %1878 = vmatpush3.bf16.msra.mxu1 (!%p1550_p9), %v1790_v28  ;;  %v1802_v38 = vpack.c.bf16 (!%p1550_p9), %v913_v37, %v912_v36 }
 0x169   : > { %1795 = vmatprep.subr.bf16.mxu0 (!%p1550_p9), %v1794_v30  ;;  %1871 = vmatprep.subr.bf16.mxu1 (!%p1550_p9), %v1794_v30 }
 0x16c   : > { %1797 = vmatpush3.bf16.msra.mxu0 (!%p1550_p9), %v1794_v30  ;;  %1879 = vmatpush3.bf16.msra.mxu1 (!%p1550_p9), %v1794_v30 }
 0x16d   : > { %1799 = vmatprep.subr.bf16.mxu0 (!%p1550_p9), %v1798_v33  ;;  %1872 = vmatprep.subr.bf16.mxu1 (!%p1550_p9), %v1798_v33 }
 0x16e   : > { %1667 = vmatmul.mubr.bf16.gmra.mrb[4].mxu0 %v2124_v39  ;;  %1675 = vmatmul.mubr.bf16.gmra.mrb[4].mxu1 %v2125_v40  ;;  %v914_v39 = vld [vmem:[%s2911_s19 + $0x40] sm:$0xff] (!%p1550_p9)  ;;  %v915_v40 = vld [vmem:[%s2911_s19 + $0x48] sm:$0xff] (!%p1550_p9) }
 0x170   : > { %1801 = vmatpush3.bf16.msra.mxu0 (!%p1550_p9), %v1798_v33  ;;  %1880 = vmatpush3.bf16.msra.mxu1 (!%p1550_p9), %v1798_v33 }
 0x171   : > { %1803 = vmatprep.subr.bf16.mxu0 (!%p1550_p9), %v1802_v38  ;;  %1873 = vmatprep.subr.bf16.mxu1 (!%p1550_p9), %v1802_v38 }
 0x174   : > { %1805 = vmatpush3.bf16.msra.mxu0 (!%p1550_p9), %v1802_v38  ;;  %1881 = vmatpush3.bf16.msra.mxu1 (!%p1550_p9), %v1802_v38 }
 0x239   : > { %v1664_v45 = vpop.f32.mrb[0].mxu0  ;;  %v1672_v46 = vpop.f32.mrb[0].mxu1 }
 0x23a   : > { %v856_v49 = vadd.f32 %v1664_v45, %v679_v41  ;;  %v864_v50 = vadd.f32 %v1672_v46, %v687_v42  ;;  %v791_v51 = vpop.f32.mrb[1].mxu0  ;;  %v823_v52 = vpop.f32.mrb[1].mxu1  ;;  %v1806_v41 = vpack.c.bf16 (!%p1550_p9), %v915_v40, %v914_v39  ;;  %v916_v42 = vld [vmem:[%s2911_s19 + $0x50] sm:$0xff] (!%p1550_p9)  ;;  %v918_v45 = vld [vmem:[%s2911_s19 + $0x60] sm:$0xff] (!%p1550_p9)  ;;  %v919_v46 = vld [vmem:[%s2911_s19 + $0x68] sm:$0xff] (!%p1550_p9) }
 0x23b   : > { %v854_v55 = vadd.f32 %v791_v51, %v677_v43  ;;  %v862_v56 = vadd.f32 %v823_v52, %v685_v44  ;;  %v1665_v57 = vpop.f32.mrb[2].mxu0  ;;  %v1673_v58 = vpop.f32.mrb[2].mxu1  ;;  %v917_v43 = vld [vmem:[%s2911_s19 + $0x58] sm:$0xff] (!%p1550_p9) }
 0x23c   : > { %872 = vst [vmem:[#allocation3 + $0x10] sm:$0xff] %v856_v49  ;;  %880 = vst [vmem:[#allocation3 + $0x50] sm:$0xff] %v864_v50  ;;  %v857_v59 = vadd.f32 %v1665_v57, %v680_v47  ;;  %v865_v60 = vadd.f32 %v1673_v58, %v688_v48  ;;  %v794_v61 = vpop.f32.mrb[3].mxu0  ;;  %v826_v62 = vpop.f32.mrb[3].mxu1  ;;  %1807 = vmatprep.subr.bf16.mxu0 (!%p1550_p9), %v1806_v41  ;;  %1874 = vmatprep.subr.bf16.mxu1 (!%p1550_p9), %v1806_v41  ;;  %v920_v48 = vld [vmem:[%s2911_s19 + $0x70] sm:$0xff] (!%p1550_p9)  ;;  %v921_v49 = vld [vmem:[%s2911_s19 + $0x78] sm:$0xff] (!%p1550_p9) }
 0x23d   : > { %870 = vst [vmem:[#allocation3] sm:$0xff] %v854_v55  ;;  %878 = vst [vmem:[#allocation3 + $0x40] sm:$0xff] %v862_v56  ;;  %v855_v63 = vadd.f32 %v794_v61, %v678_v53  ;;  %v863_v0 = vadd.f32 %v826_v62, %v686_v54  ;;  %v1810_v44 = vpack.c.bf16 (!%p1550_p9), %v917_v43, %v916_v42  ;;  %1809 = vmatpush3.bf16.msra.mxu0 (!%p1550_p9), %v1806_v41  ;;  %s3322_s19 = sld [smem:[#allocation26_spill]] (!%p1550_p9) }
 0x23e   : > { %873 = vst [vmem:[#allocation3 + $0x18] sm:$0xff] %v857_v59  ;;  %881 = vst [vmem:[#allocation3 + $0x58] sm:$0xff] %v865_v60  ;;  %1882 = vmatpush3.bf16.msra.mxu1 (!%p1550_p9), %v1806_v41  ;;  %v1814_v47 = vpack.c.bf16 (!%p1550_p9), %v919_v46, %v918_v45  ;;  %v1818_v50 = vpack.c.bf16 (!%p1550_p9), %v921_v49, %v920_v48 }
 0x23f   : > { %871 = vst [vmem:[#allocation3 + $0x8] sm:$0xff] %v855_v63  ;;  %879 = vst [vmem:[#allocation3 + $0x48] sm:$0xff] %v863_v0  ;;  %1811 = vmatprep.subr.bf16.mxu0 (!%p1550_p9), %v1810_v44  ;;  %1875 = vmatprep.subr.bf16.mxu1 (!%p1550_p9), %v1810_v44 }
 0x241   : > { %v1668_v5 = vpop.f32.mrb[4].mxu0  ;;  %v1676_v6 = vpop.f32.mrb[4].mxu1  ;;  %889 = sbr.rel (%p1550_p9) target bundleno = 1069 (0x42d), region = 80  ;;  %1813 = vmatpush3.bf16.msra.mxu0 (!%p1550_p9), %v1810_v44 }
 0x242   : > { %v860_v9 = vadd.f32 %v1668_v5, %v683_v1  ;;  %v868_v10 = vadd.f32 %v1676_v6, %v691_v2  ;;  %v807_v11 = vpop.f32.mrb[5].mxu0  ;;  %v839_v12 = vpop.f32.mrb[5].mxu1  ;;  %1883 = vmatpush3.bf16.msra.mxu1 (!%p1550_p9), %v1810_v44  ;;  %1815 = vmatprep.subr.bf16.mxu0 (!%p1550_p9), %v1814_v47  ;;  %v1551_v1 = vld [vmem:[%s2917_s6] ss:$0 sm:$0xff] (!%p1550_p9) }
 0x243   : > { %v858_v15 = vadd.f32 %v807_v11, %v681_v3  ;;  %v866_v16 = vadd.f32 %v839_v12, %v689_v4  ;;  %v1669_v17 = vpop.f32.mrb[6].mxu0  ;;  %v1677_v18 = vpop.f32.mrb[6].mxu1  ;;  %1876 = vmatprep.subr.bf16.mxu1 (!%p1550_p9), %v1814_v47  ;;  %v892_v53 = vld [vmem:[#allocation3 + $0x10] sm:$0xff] (!%p1550_p9)  ;;  %s1555_s7 = sshll.u32 (!%p1550_p9), %s3322_s19, 7 }
 0x244   : > { %876 = vst [vmem:[#allocation3 + $0x30] sm:$0xff] %v860_v9  ;;  %884 = vst [vmem:[#allocation3 + $0x70] sm:$0xff] %v868_v10  ;;  %v861_v19 = vadd.f32 %v1669_v17, %v684_v7  ;;  %v869_v20 = vadd.f32 %v1677_v18, %v692_v8  ;;  %v810_v21 = vpop.f32.mrb[7].mxu0  ;;  %v842_v22 = vpop.f32.mrb[7].mxu1  ;;  %v890_v34 = vld [vmem:[#allocation3] sm:$0xff] (!%p1550_p9)  ;;  %v900_v54 = vld [vmem:[#allocation3 + $0x50] sm:$0xff] (!%p1550_p9) }
 0x245   : > { %874 = vst [vmem:[#allocation3 + $0x20] sm:$0xff] %v858_v15  ;;  %882 = vst [vmem:[#allocation3 + $0x60] sm:$0xff] %v866_v16  ;;  %v859_v23 = vadd.f32 %v810_v21, %v682_v13  ;;  %v867_v24 = vadd.f32 %v842_v22, %v690_v14  ;;  %v898_v35 = vld [vmem:[#allocation3 + $0x40] sm:$0xff] (!%p1550_p9)  ;;  %1710 = vmatprep.mubr.f32.mxu0 (!%p1550_p9), %v890_v34  ;;  %1817 = vmatpush3.bf16.msra.mxu0 (!%p1550_p9), %v1814_v47  ;;  %v893_v55 = vld [vmem:[#allocation3 + $0x18] sm:$0xff] (!%p1550_p9) }
 0x246   : > { %877 = vst [vmem:[#allocation3 + $0x38] sm:$0xff] %v861_v19  ;;  %885 = vst [vmem:[#allocation3 + $0x78] sm:$0xff] %v869_v20  ;;  %1722 = vmatprep.mubr.f32.mxu1 (!%p1550_p9), %v898_v35  ;;  %1884 = vmatpush3.bf16.msra.mxu1 (!%p1550_p9), %v1814_v47  ;;  %v891_v51 = vld [vmem:[#allocation3 + $0x8] sm:$0xff] (!%p1550_p9)  ;;  %v901_v56 = vld [vmem:[#allocation3 + $0x58] sm:$0xff] (!%p1550_p9) }
 0x247   : > { %875 = vst [vmem:[#allocation3 + $0x28] sm:$0xff] %v859_v23  ;;  %883 = vst [vmem:[#allocation3 + $0x68] sm:$0xff] %v867_v24  ;;  %1819 = vmatprep.subr.bf16.mxu0 (!%p1550_p9), %v1818_v50  ;;  %1877 = vmatprep.subr.bf16.mxu1 (!%p1550_p9), %v1818_v50  ;;  %v899_v52 = vld [vmem:[#allocation3 + $0x48] sm:$0xff] (!%p1550_p9) }
 0x248   : > { %s3364_s5 = smov (!%p1091_p0, %s1095_s5), %s1094_s16 }
 0x249   : > { %1821 = vmatpush3.bf16.msra.mxu0 %v1818_v50  ;;  %p1554_p4 = scmp.lt.s32.totalorder %s3364_s5, 0  ;;  %s1101_s10 = sadd.s32 2, %s3364_s5 }
 0x24a   : > { %1885 = vmatpush3.bf16.msra.mxu1 %v1818_v50 }
 0x24b   : > { %v896_v61 = vld [vmem:[#allocation3 + $0x30] sm:$0xff]  ;;  %s3366_s10 = smov (!%p1554_p4, %s1101_s10), %s3364_s5 }
 0x24c   : > { %1711 = vmatmul.mubr.f32.vlgmr.msra.gmra.mrb[0].mxu0 %v891_v51  ;;  %v894_v57 = vld [vmem:[#allocation3 + $0x20] sm:$0xff]  ;;  %v904_v62 = vld [vmem:[#allocation3 + $0x70] sm:$0xff]  ;;  %s1103_s13 = smul.u32 384, %s3366_s10 }
 0x24d   : > { %1723 = vmatmul.mubr.f32.vlgmr.msra.gmra.mrb[0].mxu1 %v899_v52  ;;  %1713 = vmatprep.mubr.f32.mxu0 %v892_v53  ;;  %v902_v58 = vld [vmem:[#allocation3 + $0x60] sm:$0xff]  ;;  %v897_v63 = vld [vmem:[#allocation3 + $0x38] sm:$0xff] }
 0x24e   : > { %1725 = vmatprep.mubr.f32.mxu1 %v900_v54  ;;  %v895_v59 = vld [vmem:[#allocation3 + $0x28] sm:$0xff]  ;;  %v905_v0 = vld [vmem:[#allocation3 + $0x78] sm:$0xff]  ;;  %s1113_s26 = sadd.s32 %s1555_s7, %s1103_s13 }
 0x24f   : > { %v903_v60 = vld [vmem:[#allocation3 + $0x68] sm:$0xff]  ;;  %s1114_s4 = sshra.s32 %s1113_s26, 4 }
 0x250   : > { %1714 = vmatmul.mubr.f32.gmra.mrb[2].mxu0 %v893_v55  ;;  %s1556_s9 = sshll.u32 %s1114_s4, 3 }
 0x251   : > { %1726 = vmatmul.mubr.f32.gmra.mrb[2].mxu1 %v901_v56  ;;  %1716 = vmatprep.mubr.f32.mxu0 %v894_v57  ;;  %s3004_s6 = scalar_lea.vmem [#allocation2], %s1556_s9 }
 0x252   : > { %1728 = vmatprep.mubr.f32.mxu1 %v902_v58  ;;  %v1130_v58 = vld [vmem:[#allocation11] sm:$0xff] (!%p1557_p12) }
 0x254   : > { %1717 = vmatmul.mubr.f32.gmra.mrb[4].mxu0 %v895_v59  ;;  %v1131_v59 = vld [vmem:[#allocation11 + $0x8] sm:$0xff] (!%p1557_p12) }
 0x255   : > { %1729 = vmatmul.mubr.f32.gmra.mrb[4].mxu1 %v903_v60  ;;  %1719 = vmatprep.mubr.f32.mxu0 %v896_v61  ;;  %v1132_v60 = vld [vmem:[#allocation11 + $0x10] sm:$0xff] (!%p1557_p12)  ;;  %v1822_v61 = vpack.c.bf16 (!%p1557_p12), %v1131_v59, %v1130_v58 }
 0x256   : > { %1731 = vmatprep.mubr.f32.mxu1 %v904_v62  ;;  %v1133_v62 = vld [vmem:[#allocation11 + $0x18] sm:$0xff] (!%p1557_p12) }
 0x257   : > { %1823 = vmatprep.subr.bf16.mxu0 (!%p1557_p12), %v1822_v61  ;;  %1886 = vmatprep.subr.bf16.mxu1 (!%p1557_p12), %v1822_v61 }
 0x258   : > { %1720 = vmatmul.mubr.f32.gmra.mrb[6].mxu0 %v897_v63  ;;  %v1826_v63 = vpack.c.bf16 (!%p1557_p12), %v1133_v62, %v1132_v60  ;;  %1894 = vmatpush3.bf16.msra.mxu1 (!%p1557_p12), %v1822_v61 }
 0x259   : > { %1732 = vmatmul.mubr.f32.gmra.mrb[6].mxu1 %v905_v0  ;;  %v1134_v0 = vld [vmem:[#allocation11 + $0x20] sm:$0xff] (!%p1557_p12)  ;;  %1825 = vmatpush3.bf16.msra.mxu0 (!%p1557_p12), %v1822_v61 }
 0x25a   : > { %1827 = vmatprep.subr.bf16.mxu0 (!%p1557_p12), %v1826_v63  ;;  %1887 = vmatprep.subr.bf16.mxu1 (!%p1557_p12), %v1826_v63 }
 0x25c   : > { %1895 = vmatpush3.bf16.msra.mxu1 (!%p1557_p12), %v1826_v63 }
 0x25d   : > { %1829 = vmatpush3.bf16.msra.mxu0 (!%p1557_p12), %v1826_v63 }
 0x31f   : > { %v1712_v2 = vpop.f32.mrb[0].mxu0 }
 0x320   : > { %v1724_v3 = vpop.f32.mrb[0].mxu1  ;;  %v2978_v4 = vadd.f32 %v1712_v2, %v1551_v1  ;;  %v995_v6 = vpop.f32.mrb[1].mxu0 }
 0x321   : > { %v2980_v5 = vadd.f32 %v1724_v3, %v1551_v1  ;;  %v1035_v7 = vpop.f32.mrb[1].mxu1  ;;  %v2982_v8 = vadd.f32 %v1551_v1, %v995_v6  ;;  %v1136_v3 = vld [vmem:[#allocation11 + $0x30] sm:$0xff] (!%p1557_p12)  ;;  %v1137_v6 = vld [vmem:[#allocation11 + $0x38] sm:$0xff] (!%p1557_p12) }
 0x322   : > { %v2984_v9 = vadd.f32 %v1551_v1, %v1035_v7  ;;  %v1075_v10 = vmax.f32 %v2978_v4, 0.0  ;;  %v1834_v7 = vpack.c.bf16 (!%p1557_p12), %v1137_v6, %v1136_v3  ;;  %v1558_v4 = vld [vmem:[#allocation12] ss:$0 sm:$0xff] (!%p1557_p12) }
 0x323   : > { %v1083_v11 = vmax.f32 %v2980_v5, 0.0  ;;  %v1074_v12 = vmax.f32 %v2982_v8, 0.0  ;;  %v1715_v14 = vpop.f32.mrb[2].mxu0  ;;  %v1138_v8 = vld [vmem:[#allocation11 + $0x40] sm:$0xff] (!%p1557_p12) }
 0x324   : > { %v1082_v13 = vmax.f32 %v2984_v9, 0.0  ;;  %v1727_v15 = vpop.f32.mrb[2].mxu1  ;;  %v2990_v16 = vadd.f32 %v1715_v14, %v1551_v1  ;;  %v1005_v18 = vpop.f32.mrb[3].mxu0  ;;  %v1139_v9 = vld [vmem:[#allocation11 + $0x48] sm:$0xff] (!%p1557_p12)  ;;  %v1141_v14 = vld [vmem:[#allocation11 + $0x58] sm:$0xff] (!%p1557_p12) }
 0x325   : > { %v2992_v17 = vadd.f32 %v1727_v15, %v1551_v1  ;;  %v1045_v19 = vpop.f32.mrb[3].mxu1  ;;  %v1104_v20 = vpack.c.bf16 %v1075_v10, %v1074_v12  ;;  %v2998_v22 = vadd.f32 %v1551_v1, %v1005_v18  ;;  %1766 = vmatprep.mubr.f32.mxu0 (!%p1557_p12), %v1074_v12  ;;  %v1838_v12 = vpack.c.bf16 (!%p1557_p12), %v1139_v9, %v1138_v8  ;;  %v1142_v18 = vld [vmem:[#allocation11 + $0x60] sm:$0xff] (!%p1557_p12) }
 0x326   : > { %v1108_v21 = vpack.c.bf16 %v1083_v11, %v1082_v13  ;;  %v3000_v23 = vadd.f32 %v1551_v1, %v1045_v19  ;;  %v1077_v24 = vmax.f32 %v2990_v16, 0.0  ;;  %1778 = vmatprep.mubr.f32.mxu1 (!%p1557_p12), %v1082_v13  ;;  %v1140_v13 = vld [vmem:[#allocation11 + $0x50] sm:$0xff] (!%p1557_p12)  ;;  %v1143_v19 = vld [vmem:[#allocation11 + $0x68] sm:$0xff] (!%p1557_p12) }
 0x327   : > { %v1085_v25 = vmax.f32 %v2992_v17, 0.0  ;;  %1118 = vst [vmem:[%s3004_s6] sm:$0xff] %v1104_v20  ;;  %v1076_v26 = vmax.f32 %v2998_v22, 0.0  ;;  %v1718_v28 = vpop.f32.mrb[4].mxu0  ;;  %v1842_v15 = vpack.c.bf16 (!%p1557_p12), %v1141_v14, %v1140_v13  ;;  %v1846_v20 = vpack.c.bf16 (!%p1557_p12), %v1143_v19, %v1142_v18 }
 0x328   : > { %1122 = vst [vmem:[%s3004_s6 + $0x20] sm:$0xff] %v1108_v21  ;;  %v1084_v27 = vmax.f32 %v3000_v23, 0.0  ;;  %v1730_v29 = vpop.f32.mrb[4].mxu1  ;;  %v3010_v30 = vadd.f32 %v1718_v28, %v1551_v1  ;;  %v1015_v32 = vpop.f32.mrb[5].mxu0  ;;  %v1144_v21 = vld [vmem:[#allocation11 + $0x70] sm:$0xff] (!%p1557_p12)  ;;  %v1145_v28 = vld [vmem:[#allocation11 + $0x78] sm:$0xff] (!%p1557_p12) }
 0x329   : > { %v3012_v31 = vadd.f32 %v1730_v29, %v1551_v1  ;;  %v1055_v33 = vpop.f32.mrb[5].mxu1  ;;  %v1105_v34 = vpack.c.bf16 %v1077_v24, %v1076_v26  ;;  %v3022_v36 = vadd.f32 %v1551_v1, %v1015_v32  ;;  %v1850_v29 = vpack.c.bf16 (!%p1557_p12), %v1145_v28, %v1144_v21 }
 0x32a   : > { %v1109_v35 = vpack.c.bf16 %v1085_v25, %v1084_v27  ;;  %v3024_v37 = vadd.f32 %v1551_v1, %v1055_v33  ;;  %v1079_v38 = vmax.f32 %v3010_v30, 0.0 }
 0x32b   : > { %v1087_v39 = vmax.f32 %v3012_v31, 0.0  ;;  %1119 = vst [vmem:[%s3004_s6 + $0x8] sm:$0xff] %v1105_v34  ;;  %v1078_v40 = vmax.f32 %v3022_v36, 0.0  ;;  %v1721_v42 = vpop.f32.mrb[6].mxu0 }
 0x32c   : > { %1123 = vst [vmem:[%s3004_s6 + $0x28] sm:$0xff] %v1109_v35  ;;  %v1086_v41 = vmax.f32 %v3024_v37, 0.0  ;;  %v1733_v43 = vpop.f32.mrb[6].mxu1  ;;  %v3032_v44 = vadd.f32 %v1721_v42, %v1551_v1  ;;  %v1025_v46 = vpop.f32.mrb[7].mxu0 }
 0x32d   : > { %v3034_v45 = vadd.f32 %v1733_v43, %v1551_v1  ;;  %v1065_v47 = vpop.f32.mrb[7].mxu1  ;;  %v1106_v48 = vpack.c.bf16 %v1079_v38, %v1078_v40  ;;  %v3044_v50 = vadd.f32 %v1551_v1, %v1025_v46 }
 0x32e   : > { %v1110_v49 = vpack.c.bf16 %v1087_v39, %v1086_v41  ;;  %v3046_v51 = vadd.f32 %v1551_v1, %v1065_v47  ;;  %v1081_v52 = vmax.f32 %v3032_v44, 0.0  ;;  %1129 = sbr.rel (%p1557_p12) target bundleno = 1069 (0x42d), region = 84  ;;  %v1135_v1 = vld [vmem:[#allocation11 + $0x28] sm:$0xff] (!%p1557_p12) }
 0x32f   : > { %v1089_v53 = vmax.f32 %v3034_v45, 0.0  ;;  %1120 = vst [vmem:[%s3004_s6 + $0x10] sm:$0xff] %v1106_v48  ;;  %v1080_v54 = vmax.f32 %v3044_v50, 0.0  ;;  %v1830_v2 = vpack.c.bf16 (!%p1557_p12), %v1135_v1, %v1134_v0 }
 0x330   : > { %1124 = vst [vmem:[%s3004_s6 + $0x30] sm:$0xff] %v1110_v49  ;;  %v1088_v55 = vmax.f32 %v3046_v51, 0.0 }
 0x331   : > { %v1107_v56 = vpack.c.bf16 %v1081_v52, %v1080_v54  ;;  %1831 = vmatprep.subr.bf16.mxu0 (!%p1557_p12), %v1830_v2  ;;  %1888 = vmatprep.subr.bf16.mxu1 (!%p1557_p12), %v1830_v2 }
 0x332   : > { %v1111_v57 = vpack.c.bf16 %v1089_v53, %v1088_v55  ;;  %1833 = vmatpush3.bf16.msra.mxu0 (!%p1557_p12), %v1830_v2  ;;  %1896 = vmatpush3.bf16.msra.mxu1 (!%p1557_p12), %v1830_v2 }
 0x333   : > { %1121 = vst [vmem:[%s3004_s6 + $0x18] sm:$0xff] %v1107_v56  ;;  %1835 = vmatprep.subr.bf16.mxu0 (!%p1557_p12), %v1834_v7  ;;  %1889 = vmatprep.subr.bf16.mxu1 (!%p1557_p12), %v1834_v7 }
 0x334   : > { %1125 = vst [vmem:[%s3004_s6 + $0x38] sm:$0xff] %v1111_v57 }
 0x336   : > { %1837 = vmatpush3.bf16.msra.mxu0 %v1834_v7  ;;  %1897 = vmatpush3.bf16.msra.mxu1 %v1834_v7 }
 0x337   : > { %1839 = vmatprep.subr.bf16.mxu0 %v1838_v12  ;;  %1890 = vmatprep.subr.bf16.mxu1 %v1838_v12 }
 0x33a   : > { %1841 = vmatpush3.bf16.msra.mxu0 %v1838_v12  ;;  %1898 = vmatpush3.bf16.msra.mxu1 %v1838_v12 }
 0x33b   : > { %1843 = vmatprep.subr.bf16.mxu0 %v1842_v15  ;;  %1891 = vmatprep.subr.bf16.mxu1 %v1842_v15 }
 0x33e   : > { %1845 = vmatpush3.bf16.msra.mxu0 %v1842_v15  ;;  %1899 = vmatpush3.bf16.msra.mxu1 %v1842_v15 }
 0x33f   : > { %1847 = vmatprep.subr.bf16.mxu0 %v1846_v20  ;;  %1892 = vmatprep.subr.bf16.mxu1 %v1846_v20 }
 0x342   : > { %1849 = vmatpush3.bf16.msra.mxu0 %v1846_v20  ;;  %1900 = vmatpush3.bf16.msra.mxu1 %v1846_v20 }
 0x343   : > { %1851 = vmatprep.subr.bf16.mxu0 %v1850_v29  ;;  %1893 = vmatprep.subr.bf16.mxu1 %v1850_v29 }
 0x346   : > { %1853 = vmatpush3.bf16.msra.mxu0 %v1850_v29  ;;  %1901 = vmatpush3.bf16.msra.mxu1 %v1850_v29 }
 0x349   : > { %1767 = vmatmul.mubr.f32.vlgmr.msra.gmra.mrb[0].mxu0 %v1075_v10  ;;  %1779 = vmatmul.mubr.f32.vlgmr.msra.gmra.mrb[0].mxu1 %v1083_v11 }
 0x34a   : > { %1769 = vmatprep.mubr.f32.mxu0 %v1076_v26  ;;  %1781 = vmatprep.mubr.f32.mxu1 %v1084_v27 }
 0x34d   : > { %1770 = vmatmul.mubr.f32.gmra.mrb[2].mxu0 %v1077_v24  ;;  %1782 = vmatmul.mubr.f32.gmra.mrb[2].mxu1 %v1085_v25 }
 0x34e   : > { %1772 = vmatprep.mubr.f32.mxu0 %v1078_v40  ;;  %1784 = vmatprep.mubr.f32.mxu1 %v1086_v41 }
 0x351   : > { %1773 = vmatmul.mubr.f32.gmra.mrb[4].mxu0 %v1079_v38  ;;  %1785 = vmatmul.mubr.f32.gmra.mrb[4].mxu1 %v1087_v39 }
 0x352   : > { %1775 = vmatprep.mubr.f32.mxu0 %v1080_v54  ;;  %1787 = vmatprep.mubr.f32.mxu1 %v1088_v55 }
 0x355   : > { %1776 = vmatmul.mubr.f32.gmra.mrb[6].mxu0 %v1081_v52  ;;  %1788 = vmatmul.mubr.f32.gmra.mrb[6].mxu1 %v1089_v53 }
 0x41c   : > { %v1768_v5 = vpop.f32.mrb[0].mxu0  ;;  %v1780_v10 = vpop.f32.mrb[0].mxu1 }
 0x41d   : > { %v1225_v11 = vadd.f32 %v1768_v5, %v1558_v4  ;;  %v1265_v16 = vadd.f32 %v1780_v10, %v1558_v4  ;;  %v1219_v17 = vpop.f32.mrb[1].mxu0  ;;  %v1259_v22 = vpop.f32.mrb[1].mxu1 }
 0x41e   : > { %v1220_v23 = vadd.f32 %v1558_v4, %v1219_v17  ;;  %v1260_v24 = vadd.f32 %v1558_v4, %v1259_v22 }
 0x41f   : > { %1299 = vst [vmem:[%s2933_s30 + $0x8] sm:$0xff] %v1225_v11  ;;  %1307 = vst [vmem:[%s2933_s30 + $0x48] sm:$0xff] %v1265_v16 }
 0x420   : > { %1298 = vst [vmem:[%s2933_s30] sm:$0xff] %v1220_v23  ;;  %1306 = vst [vmem:[%s2933_s30 + $0x40] sm:$0xff] %v1260_v24  ;;  %v1771_v25 = vpop.f32.mrb[2].mxu0  ;;  %v1783_v26 = vpop.f32.mrb[2].mxu1 }
 0x421   : > { %v1235_v27 = vadd.f32 %v1771_v25, %v1558_v4  ;;  %v1275_v30 = vadd.f32 %v1783_v26, %v1558_v4  ;;  %v1229_v31 = vpop.f32.mrb[3].mxu0  ;;  %v1269_v32 = vpop.f32.mrb[3].mxu1 }
 0x422   : > { %v1230_v33 = vadd.f32 %v1558_v4, %v1229_v31  ;;  %v1270_v34 = vadd.f32 %v1558_v4, %v1269_v32 }
 0x423   : > { %1301 = vst [vmem:[%s2933_s30 + $0x18] sm:$0xff] %v1235_v27  ;;  %1309 = vst [vmem:[%s2933_s30 + $0x58] sm:$0xff] %v1275_v30 }
 0x424   : > { %1300 = vst [vmem:[%s2933_s30 + $0x10] sm:$0xff] %v1230_v33  ;;  %1308 = vst [vmem:[%s2933_s30 + $0x50] sm:$0xff] %v1270_v34  ;;  %v1774_v35 = vpop.f32.mrb[4].mxu0  ;;  %v1786_v36 = vpop.f32.mrb[4].mxu1 }
 0x425   : > { %v1245_v37 = vadd.f32 %v1774_v35, %v1558_v4  ;;  %v1285_v38 = vadd.f32 %v1786_v36, %v1558_v4  ;;  %v1239_v39 = vpop.f32.mrb[5].mxu0  ;;  %v1279_v40 = vpop.f32.mrb[5].mxu1 }
 0x426   : > { %v1240_v41 = vadd.f32 %v1558_v4, %v1239_v39  ;;  %v1280_v42 = vadd.f32 %v1558_v4, %v1279_v40 }
 0x427   : > { %1303 = vst [vmem:[%s2933_s30 + $0x28] sm:$0xff] %v1245_v37  ;;  %1311 = vst [vmem:[%s2933_s30 + $0x68] sm:$0xff] %v1285_v38 }
 0x428   : > { %1302 = vst [vmem:[%s2933_s30 + $0x20] sm:$0xff] %v1240_v41  ;;  %1310 = vst [vmem:[%s2933_s30 + $0x60] sm:$0xff] %v1280_v42  ;;  %v1777_v43 = vpop.f32.mrb[6].mxu0  ;;  %v1789_v44 = vpop.f32.mrb[6].mxu1 }
 0x429   : > { %v1255_v45 = vadd.f32 %v1777_v43, %v1558_v4  ;;  %v1295_v46 = vadd.f32 %v1789_v44, %v1558_v4  ;;  %v1249_v47 = vpop.f32.mrb[7].mxu0  ;;  %v1289_v48 = vpop.f32.mrb[7].mxu1 }
 0x42a   : > { %v1250_v49 = vadd.f32 %v1558_v4, %v1249_v47  ;;  %v1290_v50 = vadd.f32 %v1558_v4, %v1289_v48 }
 0x42b   : > { %1305 = vst [vmem:[%s2933_s30 + $0x38] sm:$0xff] %v1255_v45  ;;  %1313 = vst [vmem:[%s2933_s30 + $0x78] sm:$0xff] %v1295_v46 }
 0x42c   : > { %1304 = vst [vmem:[%s2933_s30 + $0x30] sm:$0xff] %v1250_v49  ;;  %1312 = vst [vmem:[%s2933_s30 + $0x70] sm:$0xff] %v1290_v50 }
 0x42d PF: > { %s3323_s1 = sld [smem:[#allocation26_spill]]  ;;  %s3324_s21 = sld [smem:[#allocation45_spill]] }
 0x42e   : > { %s1328_s12 = sshll.u32 %s2933_s30, 4  ;;  %s3120_s19 = scalar_lea.sflag [#allocation6], %s400_s0  ;;  %s3116_s12 = int_to_ptr.vmem [resolvable:$true] %s1328_s12 }
 0x42f   : > { %s2300_s27 = scalar_lea.vmem %s3116_s12, 2048  ;;  %p3326_p7 = scmp.ne.s32.totalorder %s3277_s24, 0 }
 0x430   : > { %p2301_p8 = scmp.ne.s32.totalorder %s3116_s12, %s2300_s27  ;;  %s2492_s8 = smov [#allocation14]  }
 0x431   : > { %s2304_s2 = sshll.u32 %s2492_s8, 4  ;;  %s2305_s2 = int_to_ptr.vmem [resolvable:$false] %s2304_s2 }
 0x432   : > { %p2302_p6 = pnand %p2301_p8, %p3326_p7  ;;  %s2306_s16 = scalar_lea.vmem %s2305_s2, 4096 }
 0x433   : > { %s1565_s29 = sshll.u32 %s3323_s1, 11  ;;  %s3325_s3 = smov %s3324_s21 }
 0x434   : > { %s3113_s20 = scalar_lea.hbm %s3324_s21, %s1565_s29  ;;  %p2303_p13 = pneg %p2302_p6 }
 0x435   : > { %p2307_p5 = scmp.lt.s32.totalorder %s3116_s12, %s2305_s2  ;;  %p2308_p11 = scmp.lt.s32.totalorder %s2306_s16, %s2300_s27 }
 0x437   : > { %p2309_p1 = por %p2308_p11, %p2307_p5 }
 0x439   : > { %p2310_p2 = pnand %p2309_p1, %p2303_p13 }
 0x43b   : > { %2313 = shalt.err (!%p2310_p2)
}
 0x43c   : > { %s2314_s0 = scalar_lea.hbm %s3113_s20, 2048  ;;  %s2318_s10 = scalar_lea.hbm %s3325_s3, 6144 }
 0x43d   : > { %p2315_p10 = scmp.ne.s32.totalorder %s3113_s20, %s2314_s0  ;;  %p2319_p0 = scmp.lt.u32.totalorder %s3113_s20, %s3325_s3 }
 0x43e   : > { %p2320_p4 = scmp.lt.u32.totalorder %s2318_s10, %s2314_s0  ;;  %p2322_p8 = scmp.lt.u32.totalorder %s2314_s0, %s3113_s20 }
 0x43f   : > { %p2316_p3 = pnand %p2315_p10, %p3326_p7 }
 0x440   : > { %p2321_p12 = por %p2320_p4, %p2319_p0 }
 0x441   : > { %p2317_p9 = pneg %p2316_p3 }
 0x442   : > { %p2323_p6 = por %p2322_p8, %p2321_p12 }
 0x444   : > { %p2324_p13 = pnand %p2323_p6, %p2317_p9 }
 0x446   : > { %2327 = shalt.err (!%p2324_p13)
}
 0x447   : > { %s2493_s26 = smov 128   ;;  %s2494_s4 = smov 8  }
 0x448   : > { %1921 = dma.vmem_to_hbm [thread:$0]  (%p3326_p7), %s3116_s12, 2048, %s3113_s20, %s3120_s19, %s2493_s26, %s2493_s26, %s2494_s4  }
 0x449 PF: > { %s3327_s9 = sld [smem:[#allocation30_spill]]  ;;  %s3328_s6 = sld [smem:[#allocation21_spill]] }
 0x44a   : > { %s3329_s1 = sld [smem:[#allocation36_spill]] }
 0x44f   : > { %p1954_p5 = scmp.ge.s32.totalorder %s3327_s9, 2  ;;  %s1343_s29 = sand.u32 1, %s3328_s6  }
 0x450   : > { %p3330_p11 = scmp.ne.s32.totalorder %s3329_s1, 0  ;;  %s1344_s23 = scalar_lea.sflag [#allocation6], %s1343_s29 }
 0x452   : > { %p1944_p1 = pnand %p1954_p5, %p3330_p11 }
 0x454   : > { %2413 = dma.done.wait (!%p1944_p1), %s1344_s23, 2048  }
 0x455   : > { %2415 = vsyncadd (!%p1944_p1), %s1344_s23, 4294965248  ;;  %s24_s12 = sadd.s32 1, %s3327_s9   ;;  %s3332_s24 = sld [smem:[#allocation22_spill]] }
 0x456   : > { %p3149_p2 = scmp.ge.s32.totalorder %s24_s12, 29   ;;  %s3333_s23 = sld [smem:[#allocation35_spill]] }
 0x457   : > { %s3334_s20 = sld [smem:[#allocation23_spill]]  ;;  %s3335_s26 = sld [smem:[#allocation38_spill]] }
 0x458   : > { %s3336_s19 = sld [smem:[#allocation24_spill]]  ;;  %s3337_s29 = sld [smem:[#allocation34_spill]] }
 0x459   : > { %s3338_s30 = sld [smem:[#allocation28_spill]]  ;;  %s3339_s7 = sld [smem:[#allocation29_spill]] }
 0x45a   : > { %s3340_s9 = sld [smem:[#allocation31_spill]]  ;;  %s3341_s10 = sld [smem:[#allocation33_spill]] }
 0x45b   : > { %s3342_s2 = sld [smem:[#allocation37_spill]]  ;;  %s3343_s21 = smov %s2422_s22 }
 0x45c   : > { %s3344_s22 = smov %s3332_s24  ;;  %s3345_s24 = smov %s2434_s25 }
 0x45d   : > { %s3346_s25 = smov %s3334_s20  ;;  %s3347_s27 = smov %s2446_s28 }
 0x45e   : > { %s3348_s28 = smov %s3336_s19  ;;  %s3349_s8 = smov %s2474_s11 }
 0x45f   :  { %23 = sbr.rel (!%p3149_p2) target bundleno = 21 (0x15), region = 141 }
 0x461   : > { %s3350_s11 = smov %s3342_s2 }
 0x466   :  { %1349 = vsyncpa [#allocation5], 1 }
 0x467   :  { %1351 = vsyncpa [#allocation5 + $0x1], 1 }
 0x468   :  { %1352 = vsyncpa [#allocation8], 1 }
 0x469   :  { %1353 = vsyncpa [#allocation13], 1 }
 0x46a   :  { %1354 = vsyncpa [#allocation6], 1 }
 0x46b   :  { %1356 = vsyncpa [#allocation6 + $0x1], 1 }

</bundles_post_ra>
